<compile_context>
chip_gen: v7x
topology: tpu7x:2x2x1
jax: 0.10.0
libtpu: 0.0.40
codegen_flags: <defaults>
</compile_context>

<pallas_src>
import functools

import jax
import jax.numpy as jnp
from jax.experimental import pallas as pl
from jax.experimental.pallas import tpu as pltpu


def _round_up(x, m):
    return ((x + m - 1) // m) * m


# ----------------------------------------------------------------------------
# Kernel 1: 2-layer LSTM recurrence (time-chunked, state in VMEM scratch)
# ----------------------------------------------------------------------------
def lstm_recurrence_kernel(x_ref, w0_ref, b0_ref, w1_ref, b1_ref,
                           rnn_ref,
                           h0_ref, c0_ref, h1_ref, c1_ref,
                           *, H, Tc, B):
    # Zero the recurrent state once, at the first time chunk.
    @pl.when(pl.program_id(0) == 0)
    def _():
        h0_ref[...] = jnp.zeros_like(h0_ref)
        c0_ref[...] = jnp.zeros_like(c0_ref)
        h1_ref[...] = jnp.zeros_like(h1_ref)
        c1_ref[...] = jnp.zeros_like(c1_ref)

    # Hoist resident weight loads and bias broadcasts above the time loop
    # (JAX does not CSE broadcast_in_dim across loop iterations).
    w0 = w0_ref[...]                                   # (D+H, 4H)
    w1 = w1_ref[...]                                   # (2H, 4H)
    b0 = jnp.broadcast_to(b0_ref[...], (B, 4 * H))
    b1 = jnp.broadcast_to(b1_ref[...], (B, 4 * H))

    def cell(xh, c, w, b):
        # PyTorch gate order: i, f, g, o.  One fused gate matmul per layer.
        g = jnp.dot(xh, w, preferred_element_type=jnp.float32) + b
        i = jax.nn.sigmoid(g[:, 0 * H:1 * H])
        f = jax.nn.sigmoid(g[:, 1 * H:2 * H])
        gg = jnp.tanh(g[:, 2 * H:3 * H])
        o = jax.nn.sigmoid(g[:, 3 * H:4 * H])
        c_new = f * c + i * gg
        h_new = o * jnp.tanh(c_new)
        return h_new, c_new

    def body(t, carry):
        h0, c0, h1, c1 = carry
        x_t = x_ref[t]                                                 # (B, D)
        h0, c0 = cell(jnp.concatenate([x_t, h0], axis=-1), c0, w0, b0)
        h1, c1 = cell(jnp.concatenate([h0, h1], axis=-1), c1, w1, b1)
        rnn_ref[t] = h1                                                # only h1 stored
        return (h0, c0, h1, c1)

    carry = (h0_ref[...], c0_ref[...], h1_ref[...], c1_ref[...])
    h0, c0, h1, c1 = jax.lax.fori_loop(0, Tc, body, carry, unroll=True)
    h0_ref[...] = h0
    c0_ref[...] = c0
    h1_ref[...] = h1
    c1_ref[...] = c1


# ----------------------------------------------------------------------------
# Kernel 2: fused z/s MLP heads, batched over all (T*B) rnn_out rows
# ----------------------------------------------------------------------------
def heads_kernel(a_ref, r_ref,
                 w1_ref, b1_ref, w2_ref, b2_ref, w3_ref, b3_ref,
                 o_ref):
    a = a_ref[0]                                        # shared PReLU slope
    prelu = lambda v: jnp.where(v >= 0.0, v, a * v)

    y = r_ref[...]                                      # (tm, H)
    y = prelu(jnp.dot(y, w1_ref[...], preferred_element_type=jnp.float32)
              + b1_ref[...])
    y = prelu(jnp.dot(y, w2_ref[...], preferred_element_type=jnp.float32)
              + b2_ref[...])
    y = jnp.dot(y, w3_ref[...], preferred_element_type=jnp.float32) + b3_ref[...]
    o_ref[...] = y.astype(o_ref.dtype)                  # lane-dense (tm, OUT_pad)


# ----------------------------------------------------------------------------
# Wrapper
# ----------------------------------------------------------------------------
@functools.partial(jax.jit, static_argnames=("factor_dim", "S"))
def lstm_obs_forward(x, prepared, *, factor_dim, S):
    """x: (T, B, D) time-major (batch_first=False).
    Returns (z, s): z (T, B, 2*factor_dim), s (B, T, S)."""
    (a, w0, b0, w1, b1, wh1, bh1, wh2, bh2, wh3, bh3) = prepared

    T, B, D = x.shape
    H = w1.shape[1] // 4
    F2 = 2 * factor_dim
    OUTP = wh3.shape[1]                     # F2 + S padded to a multiple of 128

    resident = lambda arr: pl.BlockSpec(arr.shape, lambda i: (0, 0))

    # --- recurrence over time: chunked grid + in-kernel fori_loop ---
    Tc = min(T, 16)
    T_pad = _round_up(T, Tc)
    x_p = jnp.pad(x, ((0, T_pad - T), (0, 0), (0, 0))) if T_pad != T else x

    rnn_kernel = functools.partial(lstm_recurrence_kernel, H=H, Tc=Tc, B=B)
    rnn_out = pl.pallas_call(
        rnn_kernel,
        grid=(T_pad // Tc,),
        in_specs=[
            pl.BlockSpec((Tc, B, D), lambda i: (i, 0, 0)),      # time chunk of x
            resident(w0), resident(b0),                         # layer-0 fused W, b
            resident(w1), resident(b1),                         # layer-1 fused W, b
        ],
        out_specs=pl.BlockSpec((Tc, B, H), lambda i: (i, 0, 0)),
        out_shape=jax.ShapeDtypeStruct((T_pad, B, H), jnp.float32),
        scratch_shapes=[
            pltpu.VMEM((B, H), jnp.float32),   # h0
            pltpu.VMEM((B, H), jnp.float32),   # c0
            pltpu.VMEM((B, H), jnp.float32),   # h1
            pltpu.VMEM((B, H), jnp.float32),   # c1
        ],
        compiler_params=pltpu.CompilerParams(
            dimension_semantics=("arbitrary",)),   # serial time recurrence
    )(x_p, w0, b0, w1, b1)

    # --- batched heads over all (T*B) rows, parallel grid over row tiles ---
    M = T * B
    tm = min(512, _round_up(M, 8))
    M_pad = _round_up(M, tm)
    r_flat = rnn_out[:T].reshape(M, H)
    if M_pad != M:
        r_flat = jnp.pad(r_flat, ((0, M_pad - M), (0, 0)))

    heads = pl.pallas_call(
        heads_kernel,
        grid=(M_pad // tm,),
        in_specs=[
            pl.BlockSpec((1,), lambda i: (0,),
                         memory_space=pltpu.MemorySpace.SMEM),   # PReLU slope
            pl.BlockSpec((tm, H), lambda i: (i, 0)),             # rnn_out rows
            resident(wh1), resident(bh1),
            resident(wh2), resident(bh2),
            resident(wh3), resident(bh3),
        ],
        out_specs=pl.BlockSpec((tm, OUTP), lambda i: (i, 0)),
        out_shape=jax.ShapeDtypeStruct((M_pad, OUTP), jnp.float32),
        compiler_params=pltpu.CompilerParams(
            dimension_semantics=("parallel",)),    # independent rows (2nd TC on v7x)
    )(a, r_flat, wh1, bh1, wh2, bh2, wh3, bh3)

    zs = heads[:M].reshape(T, B, OUTP)
    z = zs[..., :F2]
    if S:
        s = jnp.transpose(zs[..., F2:F2 + S], (1, 0, 2))   # .permute(1, 0, 2)
    else:
        s = None
    return z, s


# ----------------------------------------------------------------------------
# Parameters: PyTorch-shaped init, then a one-time prep (transpose / fuse)
# ----------------------------------------------------------------------------
def init_params(key, D, rnn_dim, factor_dim, S):
    H = rnn_dim
    keys = iter(jax.random.split(key, 32))

    def uni(shape, bound):
        return jax.random.uniform(next(keys), shape, jnp.float32, -bound, bound)

    def lstm_layer(in_size):
        bound = 1.0 / jnp.sqrt(H)
        return dict(w_ih=uni((4 * H, in_size), bound),
                    w_hh=uni((4 * H, H), bound),
                    b_ih=uni((4 * H,), bound),
                    b_hh=uni((4 * H,), bound))

    def linear(out_f, in_f):
        bound = 1.0 / jnp.sqrt(in_f)
        return (uni((out_f, in_f), bound), uni((out_f,), bound))

    return dict(
        lstm0=lstm_layer(D),
        lstm1=lstm_layer(H),
        fc1_rnn=linear(H, H),
        fc2_rnn=linear(H, H),
        fc3_rnn=linear(factor_dim * 2, H),
        fc1_rnn_s=linear(H, H),
        fc2_rnn_s=linear(H, H),
        fc3_rnn_s=linear(S, H),
        prelu_a=jnp.float32(0.25),   # PyTorch PReLU default
    )


def prepare_params(p):
    """One-time prep: transpose to (in, out), fuse per-layer LSTM gate weights
    (w_ih || w_hh) with combined bias, fuse the two MLP heads into three
    matmuls (concat / block-diagonal), zero-pad the last head layer to a
    multiple of 128 output lanes."""
    # TODO(synk): the S == 0 path of the PyTorch module (s=None, no s-head
    # parameters) is not prepared here; this script exercises S > 0.
    t = lambda w: jnp.asarray(w, jnp.float32).T
    row = lambda b: jnp.asarray(b, jnp.float32).reshape(1, -1)

    def block_diag(a_, b_):
        z01 = jnp.zeros((a_.shape[0], b_.shape[1]), jnp.float32)
        z10 = jnp.zeros((b_.shape[0], a_.shape[1]), jnp.float32)
        return jnp.concatenate(
            [jnp.concatenate([a_, z01], axis=1),
             jnp.concatenate([z10, b_], axis=1)], axis=0)

    a = jnp.asarray(p["prelu_a"], jnp.float32).reshape(1)

    # Fused LSTM layer weights: (in + H, 4H), combined b_ih + b_hh.
    w0 = jnp.concatenate([t(p["lstm0"]["w_ih"]), t(p["lstm0"]["w_hh"])], axis=0)
    b0 = row(p["lstm0"]["b_ih"] + p["lstm0"]["b_hh"])
    w1 = jnp.concatenate([t(p["lstm1"]["w_ih"]), t(p["lstm1"]["w_hh"])], axis=0)
    b1 = row(p["lstm1"]["b_ih"] + p["lstm1"]["b_hh"])

    # Fused heads: layer1 (H, 2H), layer2 block-diag (2H, 2H),
    # layer3 block-diag (2H, F2+S) zero-padded to a multiple of 128 lanes.
    wh1 = jnp.concatenate([t(p["fc1_rnn"][0]), t(p["fc1_rnn_s"][0])], axis=1)
    bh1 = jnp.concatenate([row(p["fc1_rnn"][1]), row(p["fc1_rnn_s"][1])], axis=1)
    wh2 = block_diag(t(p["fc2_rnn"][0]), t(p["fc2_rnn_s"][0]))
    bh2 = jnp.concatenate([row(p["fc2_rnn"][1]), row(p["fc2_rnn_s"][1])], axis=1)
    wh3 = block_diag(t(p["fc3_rnn"][0]), t(p["fc3_rnn_s"][0]))
    bh3 = jnp.concatenate([row(p["fc3_rnn"][1]), row(p["fc3_rnn_s"][1])], axis=1)

    out = wh3.shape[1]
    out_pad = _round_up(out, 128)
    if out_pad != out:
        wh3 = jnp.pad(wh3, ((0, 0), (0, out_pad - out)))
        bh3 = jnp.pad(bh3, ((0, 0), (0, out_pad - out)))

    return (a, w0, b0, w1, b1, wh1, bh1, wh2, bh2, wh3, bh3)


# ----------------------------------------------------------------------------
# Pure-JAX reference (matches torch semantics) for verification
# ----------------------------------------------------------------------------
def ref_forward(x, p):
    B = x.shape[1]
    H = p["lstm0"]["w_hh"].shape[1]
    a = p["prelu_a"]
    prelu = lambda v: jnp.where(v >= 0, v, a * v)
    lin = lambda v, wb: v @ wb[0].T + wb[1]

    def lstm_cell(x_t, h, c, lp):
        g = x_t @ lp["w_ih"].T + lp["b_ih"] + h @ lp["w_hh"].T + lp["b_hh"]
        i, f, gg, o = jnp.split(g, 4, axis=-1)
        c_new = jax.nn.sigmoid(f) * c + jax.nn.sigmoid(i) * jnp.tanh(gg)
        h_new = jax.nn.sigmoid(o) * jnp.tanh(c_new)
        return h_new, c_new

    def step(carry, x_t):
        h0, c0, h1, c1 = carry
        h0, c0 = lstm_cell(x_t, h0, c0, p["lstm0"])
        h1, c1 = lstm_cell(h0, h1, c1, p["lstm1"])
        return (h0, c0, h1, c1), h1

    zeros = jnp.zeros((B, H), jnp.float32)
    _, rnn_out = jax.lax.scan(step, (zeros, zeros, zeros, zeros), x)

    z = prelu(lin(rnn_out, p["fc1_rnn"]))
    z = prelu(lin(z, p["fc2_rnn"]))
    z = lin(z, p["fc3_rnn"])

    s = prelu(lin(rnn_out, p["fc1_rnn_s"]))
    s = prelu(lin(s, p["fc2_rnn_s"]))
    s = lin(s, p["fc3_rnn_s"])
    s = jnp.transpose(s, (1, 0, 2))
    return z, s


if __name__ == "__main__":
    T, B = 8, 4              # seq length, batch
    D = 16                   # input feature dim
    rnn_dim = 32             # LSTM hidden size
    factor_dim = 16          # -> z head output 2*factor_dim = 32
    S = 8                    # s head output size

    key = jax.random.PRNGKey(0)
    k_params, k_x = jax.random.split(key)
    params = init_params(k_params, D, rnn_dim, factor_dim, S)
    prepared = prepare_params(params)

    x = jax.random.normal(k_x, (T, B, D), jnp.float32)   # batch_first=False

    z_out, s_out = lstm_obs_forward(x, prepared, factor_dim=factor_dim, S=S)
    z_out = jax.block_until_ready(z_out)
    s_out = jax.block_until_ready(s_out)

    z_ref, s_ref = ref_forward(x, params)

    assert z_out.shape == (T, B, 2 * factor_dim)
    assert s_out.shape == (B, T, S)
    assert jnp.allclose(z_out, z_ref, atol=1e-4, rtol=1e-4), (
        float(jnp.max(jnp.abs(z_out - z_ref))))
    assert jnp.allclose(s_out, s_ref, atol=1e-4, rtol=1e-4), (
        float(jnp.max(jnp.abs(s_out - s_ref))))

    print("KERNEL_OK")
</pallas_src>

<mosaic_0001>
module attributes {stable_mosaic.version = 11 : i64} {
  func.func @heads_kernel(%arg0: i32, %arg1: memref<1xf32, #tpu.memory_space<smem>>, %arg2: memref<32x32xf32, #tpu.memory_space<vmem>>, %arg3: memref<32x64xf32, #tpu.memory_space<vmem>>, %arg4: memref<1x64xf32, #tpu.memory_space<vmem>>, %arg5: memref<64x64xf32, #tpu.memory_space<vmem>>, %arg6: memref<1x64xf32, #tpu.memory_space<vmem>>, %arg7: memref<64x128xf32, #tpu.memory_space<vmem>>, %arg8: memref<1x128xf32, #tpu.memory_space<vmem>>, %arg9: memref<32x128xf32, #tpu.memory_space<vmem>>) attributes {dimension_semantics = [#tpu.dimension_semantics<parallel>], iteration_bounds = array<i64: 1>, scalar_prefetch = 0 : i64, scratch_operands = 0 : i64, tpu.core_type = #tpu.core_type<tc>, window_params = [{transform_indices = @transform_0, window_bounds = array<i64: 1>}, {transform_indices = @transform_1, window_bounds = array<i64: 32, 32>}, {pipeline_mode = #tpu.pipeline_mode<synchronous>, transform_indices = @transform_2, window_bounds = array<i64: 32, 64>}, {pipeline_mode = #tpu.pipeline_mode<synchronous>, transform_indices = @transform_3, window_bounds = array<i64: 1, 64>}, {pipeline_mode = #tpu.pipeline_mode<synchronous>, transform_indices = @transform_4, window_bounds = array<i64: 64, 64>}, {pipeline_mode = #tpu.pipeline_mode<synchronous>, transform_indices = @transform_5, window_bounds = array<i64: 1, 64>}, {pipeline_mode = #tpu.pipeline_mode<synchronous>, transform_indices = @transform_6, window_bounds = array<i64: 64, 128>}, {pipeline_mode = #tpu.pipeline_mode<synchronous>, transform_indices = @transform_7, window_bounds = array<i64: 1, 128>}, {transform_indices = @transform_8, window_bounds = array<i64: 32, 128>}]} {
    %c0 = arith.constant 0 : index
    %0 = memref.load %arg1[%c0] : memref<1xf32, #tpu.memory_space<smem>>
    %c0_0 = arith.constant 0 : index
    %c0_1 = arith.constant 0 : index
    %1 = vector.load %arg2[%c0_0, %c0_1] : memref<32x32xf32, #tpu.memory_space<vmem>>, vector<32x32xf32>
    %c0_2 = arith.constant 0 : index
    %c0_3 = arith.constant 0 : index
    %2 = vector.load %arg3[%c0_2, %c0_3] : memref<32x64xf32, #tpu.memory_space<vmem>>, vector<32x64xf32>
    %cst = arith.constant dense<0.000000e+00> : vector<32x64xf32>
    %3 = tpu.matmul %1, %2, %cst {dimension_numbers = #tpu.dot_dimension_numbers<[1], [0], [0], [1], [0, 0, 1, 1], [], []>} : vector<32x32xf32>, vector<32x64xf32>, vector<32x64xf32> -> vector<32x64xf32>
    %c0_4 = arith.constant 0 : index
    %c0_5 = arith.constant 0 : index
    %4 = vector.load %arg4[%c0_4, %c0_5] : memref<1x64xf32, #tpu.memory_space<vmem>>, vector<1x64xf32>
    %5 = vector.broadcast %4 : vector<1x64xf32> to vector<32x64xf32>
    %6 = arith.addf %3, %5 : vector<32x64xf32>
    %cst_6 = arith.constant 0.000000e+00 : f32
    %7 = vector.broadcast %cst_6 : f32 to vector<32x64xf32>
    %8 = arith.cmpf oge, %6, %7 : vector<32x64xf32>
    %9 = vector.broadcast %0 : f32 to vector<32x64xf32>
    %10 = arith.mulf %9, %6 : vector<32x64xf32>
    %11 = arith.select %8, %6, %10 : vector<32x64xi1>, vector<32x64xf32>
    %c0_7 = arith.constant 0 : index
    %c0_8 = arith.constant 0 : index
    %12 = vector.load %arg5[%c0_7, %c0_8] : memref<64x64xf32, #tpu.memory_space<vmem>>, vector<64x64xf32>
    %cst_9 = arith.constant dense<0.000000e+00> : vector<32x64xf32>
    %13 = tpu.matmul %11, %12, %cst_9 {dimension_numbers = #tpu.dot_dimension_numbers<[1], [0], [0], [1], [0, 0, 1, 1], [], []>} : vector<32x64xf32>, vector<64x64xf32>, vector<32x64xf32> -> vector<32x64xf32>
    %c0_10 = arith.constant 0 : index
    %c0_11 = arith.constant 0 : index
    %14 = vector.load %arg6[%c0_10, %c0_11] : memref<1x64xf32, #tpu.memory_space<vmem>>, vector<1x64xf32>
    %15 = vector.broadcast %14 : vector<1x64xf32> to vector<32x64xf32>
    %16 = arith.addf %13, %15 : vector<32x64xf32>
    %cst_12 = arith.constant 0.000000e+00 : f32
    %17 = vector.broadcast %cst_12 : f32 to vector<32x64xf32>
    %18 = arith.cmpf oge, %16, %17 : vector<32x64xf32>
    %19 = vector.broadcast %0 : f32 to vector<32x64xf32>
    %20 = arith.mulf %19, %16 : vector<32x64xf32>
    %21 = arith.select %18, %16, %20 : vector<32x64xi1>, vector<32x64xf32>
    %c0_13 = arith.constant 0 : index
    %c0_14 = arith.constant 0 : index
    %22 = vector.load %arg7[%c0_13, %c0_14] : memref<64x128xf32, #tpu.memory_space<vmem>>, vector<64x128xf32>
    %cst_15 = arith.constant dense<0.000000e+00> : vector<32x128xf32>
    %23 = tpu.matmul %21, %22, %cst_15 {dimension_numbers = #tpu.dot_dimension_numbers<[1], [0], [0], [1], [0, 0, 1, 1], [], []>} : vector<32x64xf32>, vector<64x128xf32>, vector<32x128xf32> -> vector<32x128xf32>
    %c0_16 = arith.constant 0 : index
    %c0_17 = arith.constant 0 : index
    %24 = vector.load %arg8[%c0_16, %c0_17] : memref<1x128xf32, #tpu.memory_space<vmem>>, vector<1x128xf32>
    %25 = vector.broadcast %24 : vector<1x128xf32> to vector<32x128xf32>
    %26 = arith.addf %23, %25 : vector<32x128xf32>
    %c0_18 = arith.constant 0 : index
    %c0_19 = arith.constant 0 : index
    %27 = vector.load %arg9[%c0_18, %c0_19] : memref<32x128xf32, #tpu.memory_space<vmem>>, vector<32x128xf32>
    tpu.vector_store %arg9[%c0_18, %c0_19], %26 {strides = array<i32>} : memref<32x128xf32, #tpu.memory_space<vmem>>, vector<32x128xf32>,
    return
  }
  func.func @transform_0(%arg0: i32) -> i32 {
    %c0_i32 = arith.constant 0 : i32
    %c0_i32_0 = arith.constant 0 : i32
    return %c0_i32 : i32
  }
  func.func @transform_1(%arg0: i32) -> (i32, i32) {
    %c0_i32 = arith.constant 0 : i32
    %c0_i32_0 = arith.constant 0 : i32
    return %arg0, %c0_i32 : i32, i32
  }
  func.func @transform_2(%arg0: i32) -> (i32, i32) {
    %c0_i32 = arith.constant 0 : i32
    %c0_i32_0 = arith.constant 0 : i32
    %c0_i32_1 = arith.constant 0 : i32
    return %c0_i32, %c0_i32_0 : i32, i32
  }
  func.func @transform_3(%arg0: i32) -> (i32, i32) {
    %c0_i32 = arith.constant 0 : i32
    %c0_i32_0 = arith.constant 0 : i32
    %c0_i32_1 = arith.constant 0 : i32
    return %c0_i32, %c0_i32_0 : i32, i32
  }
  func.func @transform_4(%arg0: i32) -> (i32, i32) {
    %c0_i32 = arith.constant 0 : i32
    %c0_i32_0 = arith.constant 0 : i32
    %c0_i32_1 = arith.constant 0 : i32
    return %c0_i32, %c0_i32_0 : i32, i32
  }
  func.func @transform_5(%arg0: i32) -> (i32, i32) {
    %c0_i32 = arith.constant 0 : i32
    %c0_i32_0 = arith.constant 0 : i32
    %c0_i32_1 = arith.constant 0 : i32
    return %c0_i32, %c0_i32_0 : i32, i32
  }
  func.func @transform_6(%arg0: i32) -> (i32, i32) {
    %c0_i32 = arith.constant 0 : i32
    %c0_i32_0 = arith.constant 0 : i32
    %c0_i32_1 = arith.constant 0 : i32
    return %c0_i32, %c0_i32_0 : i32, i32
  }
  func.func @transform_7(%arg0: i32) -> (i32, i32) {
    %c0_i32 = arith.constant 0 : i32
    %c0_i32_0 = arith.constant 0 : i32
    %c0_i32_1 = arith.constant 0 : i32
    return %c0_i32, %c0_i32_0 : i32, i32
  }
  func.func @transform_8(%arg0: i32) -> (i32, i32) {
    %c0_i32 = arith.constant 0 : i32
    %c0_i32_0 = arith.constant 0 : i32
    return %arg0, %c0_i32 : i32, i32
  }
}

module attributes {stable_mosaic.version = 11 : i64} {
  func.func @lstm_recurrence_kernel(%arg0: i32, %arg1: memref<8x4x16xf32, #tpu.memory_space<vmem>>, %arg2: memref<48x128xf32, #tpu.memory_space<vmem>>, %arg3: memref<1x128xf32, #tpu.memory_space<vmem>>, %arg4: memref<64x128xf32, #tpu.memory_space<vmem>>, %arg5: memref<1x128xf32, #tpu.memory_space<vmem>>, %arg6: memref<8x4x32xf32, #tpu.memory_space<vmem>>, %arg7: memref<4x32xf32, #tpu.memory_space<vmem>>, %arg8: memref<4x32xf32, #tpu.memory_space<vmem>>, %arg9: memref<4x32xf32, #tpu.memory_space<vmem>>, %arg10: memref<4x32xf32, #tpu.memory_space<vmem>>) attributes {dimension_semantics = [#tpu.dimension_semantics<arbitrary>], iteration_bounds = array<i64: 1>, scalar_prefetch = 0 : i64, scratch_operands = 4 : i64, tpu.core_type = #tpu.core_type<tc>, window_params = [{transform_indices = @transform_0, window_bounds = array<i64: 8, 4, 16>}, {pipeline_mode = #tpu.pipeline_mode<synchronous>, transform_indices = @transform_1, window_bounds = array<i64: 48, 128>}, {pipeline_mode = #tpu.pipeline_mode<synchronous>, transform_indices = @transform_2, window_bounds = array<i64: 1, 128>}, {pipeline_mode = #tpu.pipeline_mode<synchronous>, transform_indices = @transform_3, window_bounds = array<i64: 64, 128>}, {pipeline_mode = #tpu.pipeline_mode<synchronous>, transform_indices = @transform_4, window_bounds = array<i64: 1, 128>}, {transform_indices = @transform_5, window_bounds = array<i64: 8, 4, 32>}]} {
    %c0_i32 = arith.constant 0 : i32
    %0 = arith.cmpi eq, %arg0, %c0_i32 : i32
    %1 = arith.extui %0 : i1 to i32
    %c0_i32_0 = arith.constant 0 : i32
    %2 = arith.cmpi ne, %1, %c0_i32_0 : i32
    scf.if %2 {
      %cst_120 = arith.constant 0.000000e+00 : f32
      %523 = vector.broadcast %cst_120 : f32 to vector<4x32xf32>
      %c0_121 = arith.constant 0 : index
      %c0_122 = arith.constant 0 : index
      %524 = vector.load %arg7[%c0_121, %c0_122] : memref<4x32xf32, #tpu.memory_space<vmem>>, vector<4x32xf32>
      tpu.vector_store %arg7[%c0_121, %c0_122], %523 {strides = array<i32>} : memref<4x32xf32, #tpu.memory_space<vmem>>, vector<4x32xf32>,
      %cst_123 = arith.constant 0.000000e+00 : f32
      %525 = vector.broadcast %cst_123 : f32 to vector<4x32xf32>
      %c0_124 = arith.constant 0 : index
      %c0_125 = arith.constant 0 : index
      %526 = vector.load %arg8[%c0_124, %c0_125] : memref<4x32xf32, #tpu.memory_space<vmem>>, vector<4x32xf32>
      tpu.vector_store %arg8[%c0_124, %c0_125], %525 {strides = array<i32>} : memref<4x32xf32, #tpu.memory_space<vmem>>, vector<4x32xf32>,
      %cst_126 = arith.constant 0.000000e+00 : f32
      %527 = vector.broadcast %cst_126 : f32 to vector<4x32xf32>
      %c0_127 = arith.constant 0 : index
      %c0_128 = arith.constant 0 : index
      %528 = vector.load %arg9[%c0_127, %c0_128] : memref<4x32xf32, #tpu.memory_space<vmem>>, vector<4x32xf32>
      tpu.vector_store %arg9[%c0_127, %c0_128], %527 {strides = array<i32>} : memref<4x32xf32, #tpu.memory_space<vmem>>, vector<4x32xf32>,
      %cst_129 = arith.constant 0.000000e+00 : f32
      %529 = vector.broadcast %cst_129 : f32 to vector<4x32xf32>
      %c0_130 = arith.constant 0 : index
      %c0_131 = arith.constant 0 : index
      %530 = vector.load %arg10[%c0_130, %c0_131] : memref<4x32xf32, #tpu.memory_space<vmem>>, vector<4x32xf32>
      tpu.vector_store %arg10[%c0_130, %c0_131], %529 {strides = array<i32>} : memref<4x32xf32, #tpu.memory_space<vmem>>, vector<4x32xf32>,
    } else {
    }
    %c0 = arith.constant 0 : index
    %c0_1 = arith.constant 0 : index
    %3 = vector.load %arg2[%c0, %c0_1] : memref<48x128xf32, #tpu.memory_space<vmem>>, vector<48x128xf32>
    %c0_2 = arith.constant 0 : index
    %c0_3 = arith.constant 0 : index
    %4 = vector.load %arg4[%c0_2, %c0_3] : memref<64x128xf32, #tpu.memory_space<vmem>>, vector<64x128xf32>
    %c0_4 = arith.constant 0 : index
    %c0_5 = arith.constant 0 : index
    %5 = vector.load %arg3[%c0_4, %c0_5] : memref<1x128xf32, #tpu.memory_space<vmem>>, vector<1x128xf32>
    %6 = vector.shape_cast %5 : vector<1x128xf32> to vector<1x128xf32>
    %7 = vector.broadcast %6 : vector<1x128xf32> to vector<4x128xf32>
    %c0_6 = arith.constant 0 : index
    %c0_7 = arith.constant 0 : index
    %8 = vector.load %arg5[%c0_6, %c0_7] : memref<1x128xf32, #tpu.memory_space<vmem>>, vector<1x128xf32>
    %9 = vector.shape_cast %8 : vector<1x128xf32> to vector<1x128xf32>
    %10 = vector.broadcast %9 : vector<1x128xf32> to vector<4x128xf32>
    %c0_8 = arith.constant 0 : index
    %c0_9 = arith.constant 0 : index
    %11 = vector.load %arg7[%c0_8, %c0_9] : memref<4x32xf32, #tpu.memory_space<vmem>>, vector<4x32xf32>
    %c0_10 = arith.constant 0 : index
    %c0_11 = arith.constant 0 : index
    %12 = vector.load %arg8[%c0_10, %c0_11] : memref<4x32xf32, #tpu.memory_space<vmem>>, vector<4x32xf32>
    %c0_12 = arith.constant 0 : index
    %c0_13 = arith.constant 0 : index
    %13 = vector.load %arg9[%c0_12, %c0_13] : memref<4x32xf32, #tpu.memory_space<vmem>>, vector<4x32xf32>
    %c0_14 = arith.constant 0 : index
    %c0_15 = arith.constant 0 : index
    %14 = vector.load %arg10[%c0_14, %c0_15] : memref<4x32xf32, #tpu.memory_space<vmem>>, vector<4x32xf32>
    %c0_i32_16 = arith.constant 0 : i32
    %15 = arith.index_cast %c0_i32_16 : i32 to index
    %c0_17 = arith.constant 0 : index
    %c0_18 = arith.constant 0 : index
    %16 = vector.load %arg1[%15, %c0_17, %c0_18] : memref<8x4x16xf32, #tpu.memory_space<vmem>>, vector<1x4x16xf32>
    %17 = vector.shape_cast %16 : vector<1x4x16xf32> to vector<4x16xf32>
    %18 = tpu.concatenate %17, %11 in 1 : vector<4x16xf32>, vector<4x32xf32> -> vector<4x48xf32>
    %cst = arith.constant dense<0.000000e+00> : vector<4x128xf32>
    %19 = tpu.matmul %18, %3, %cst {dimension_numbers = #tpu.dot_dimension_numbers<[1], [0], [0], [1], [0, 0, 1, 1], [], []>} : vector<4x48xf32>, vector<48x128xf32>, vector<4x128xf32> -> vector<4x128xf32>
    %20 = arith.addf %19, %7 : vector<4x128xf32>
    %21 = vector.extract_strided_slice %20 {offsets = [0, 0], sizes = [4, 32], strides = [1, 1]} : vector<4x128xf32> to vector<4x32xf32>
    %22 = arith.negf %21 : vector<4x32xf32>
    %23 = math.exp %22 : vector<4x32xf32>
    %cst_19 = arith.constant 1.000000e+00 : f32
    %24 = vector.broadcast %cst_19 : f32 to vector<4x32xf32>
    %25 = arith.addf %24, %23 : vector<4x32xf32>
    %26 = arith.divf %24, %25 : vector<4x32xf32>
    %27 = vector.extract_strided_slice %20 {offsets = [0, 32], sizes = [4, 32], strides = [1, 1]} : vector<4x128xf32> to vector<4x32xf32>
    %28 = arith.negf %27 : vector<4x32xf32>
    %29 = math.exp %28 : vector<4x32xf32>
    %cst_20 = arith.constant 1.000000e+00 : f32
    %30 = vector.broadcast %cst_20 : f32 to vector<4x32xf32>
    %31 = arith.addf %30, %29 : vector<4x32xf32>
    %32 = arith.divf %30, %31 : vector<4x32xf32>
    %33 = vector.extract_strided_slice %20 {offsets = [0, 64], sizes = [4, 32], strides = [1, 1]} : vector<4x128xf32> to vector<4x32xf32>
    %34 = math.tanh %33 : vector<4x32xf32>
    %35 = vector.extract_strided_slice %20 {offsets = [0, 96], sizes = [4, 32], strides = [1, 1]} : vector<4x128xf32> to vector<4x32xf32>
    %36 = arith.negf %35 : vector<4x32xf32>
    %37 = math.exp %36 : vector<4x32xf32>
    %cst_21 = arith.constant 1.000000e+00 : f32
    %38 = vector.broadcast %cst_21 : f32 to vector<4x32xf32>
    %39 = arith.addf %38, %37 : vector<4x32xf32>
    %40 = arith.divf %38, %39 : vector<4x32xf32>
    %41 = arith.mulf %32, %12 : vector<4x32xf32>
    %42 = arith.mulf %26, %34 : vector<4x32xf32>
    %43 = arith.addf %41, %42 : vector<4x32xf32>
    %44 = math.tanh %43 : vector<4x32xf32>
    %45 = arith.mulf %40, %44 : vector<4x32xf32>
    %46 = tpu.concatenate %45, %13 in 1 : vector<4x32xf32>, vector<4x32xf32> -> vector<4x64xf32>
    %cst_22 = arith.constant dense<0.000000e+00> : vector<4x128xf32>
    %47 = tpu.matmul %46, %4, %cst_22 {dimension_numbers = #tpu.dot_dimension_numbers<[1], [0], [0], [1], [0, 0, 1, 1], [], []>} : vector<4x64xf32>, vector<64x128xf32>, vector<4x128xf32> -> vector<4x128xf32>
    %48 = arith.addf %47, %10 : vector<4x128xf32>
    %49 = vector.extract_strided_slice %48 {offsets = [0, 0], sizes = [4, 32], strides = [1, 1]} : vector<4x128xf32> to vector<4x32xf32>
    %50 = arith.negf %49 : vector<4x32xf32>
    %51 = math.exp %50 : vector<4x32xf32>
    %cst_23 = arith.constant 1.000000e+00 : f32
    %52 = vector.broadcast %cst_23 : f32 to vector<4x32xf32>
    %53 = arith.addf %52, %51 : vector<4x32xf32>
    %54 = arith.divf %52, %53 : vector<4x32xf32>
    %55 = vector.extract_strided_slice %48 {offsets = [0, 32], sizes = [4, 32], strides = [1, 1]} : vector<4x128xf32> to vector<4x32xf32>
    %56 = arith.negf %55 : vector<4x32xf32>
    %57 = math.exp %56 : vector<4x32xf32>
    %cst_24 = arith.constant 1.000000e+00 : f32
    %58 = vector.broadcast %cst_24 : f32 to vector<4x32xf32>
    %59 = arith.addf %58, %57 : vector<4x32xf32>
    %60 = arith.divf %58, %59 : vector<4x32xf32>
    %61 = vector.extract_strided_slice %48 {offsets = [0, 64], sizes = [4, 32], strides = [1, 1]} : vector<4x128xf32> to vector<4x32xf32>
    %62 = math.tanh %61 : vector<4x32xf32>
    %63 = vector.extract_strided_slice %48 {offsets = [0, 96], sizes = [4, 32], strides = [1, 1]} : vector<4x128xf32> to vector<4x32xf32>
    %64 = arith.negf %63 : vector<4x32xf32>
    %65 = math.exp %64 : vector<4x32xf32>
    %cst_25 = arith.constant 1.000000e+00 : f32
    %66 = vector.broadcast %cst_25 : f32 to vector<4x32xf32>
    %67 = arith.addf %66, %65 : vector<4x32xf32>
    %68 = arith.divf %66, %67 : vector<4x32xf32>
    %69 = arith.mulf %60, %14 : vector<4x32xf32>
    %70 = arith.mulf %54, %62 : vector<4x32xf32>
    %71 = arith.addf %69, %70 : vector<4x32xf32>
    %72 = math.tanh %71 : vector<4x32xf32>
    %73 = arith.mulf %68, %72 : vector<4x32xf32>
    %74 = arith.index_cast %c0_i32_16 : i32 to index
    %c0_26 = arith.constant 0 : index
    %c0_27 = arith.constant 0 : index
    %75 = vector.load %arg6[%74, %c0_26, %c0_27] : memref<8x4x32xf32, #tpu.memory_space<vmem>>, vector<1x4x32xf32>
    %76 = vector.shape_cast %75 : vector<1x4x32xf32> to vector<4x32xf32>
    %77 = vector.shape_cast %73 : vector<4x32xf32> to vector<1x4x32xf32>
    tpu.vector_store %arg6[%74, %c0_26, %c0_27], %77 {strides = array<i32>} : memref<8x4x32xf32, #tpu.memory_space<vmem>>, vector<1x4x32xf32>,
    %c1_i32 = arith.constant 1 : i32
    %78 = arith.index_cast %c1_i32 : i32 to index
    %c0_28 = arith.constant 0 : index
    %c0_29 = arith.constant 0 : index
    %79 = vector.load %arg1[%78, %c0_28, %c0_29] : memref<8x4x16xf32, #tpu.memory_space<vmem>>, vector<1x4x16xf32>
    %80 = vector.shape_cast %79 : vector<1x4x16xf32> to vector<4x16xf32>
    %81 = tpu.concatenate %80, %45 in 1 : vector<4x16xf32>, vector<4x32xf32> -> vector<4x48xf32>
    %cst_30 = arith.constant dense<0.000000e+00> : vector<4x128xf32>
    %82 = tpu.matmul %81, %3, %cst_30 {dimension_numbers = #tpu.dot_dimension_numbers<[1], [0], [0], [1], [0, 0, 1, 1], [], []>} : vector<4x48xf32>, vector<48x128xf32>, vector<4x128xf32> -> vector<4x128xf32>
    %83 = arith.addf %82, %7 : vector<4x128xf32>
    %84 = vector.extract_strided_slice %83 {offsets = [0, 0], sizes = [4, 32], strides = [1, 1]} : vector<4x128xf32> to vector<4x32xf32>
    %85 = arith.negf %84 : vector<4x32xf32>
    %86 = math.exp %85 : vector<4x32xf32>
    %cst_31 = arith.constant 1.000000e+00 : f32
    %87 = vector.broadcast %cst_31 : f32 to vector<4x32xf32>
    %88 = arith.addf %87, %86 : vector<4x32xf32>
    %89 = arith.divf %87, %88 : vector<4x32xf32>
    %90 = vector.extract_strided_slice %83 {offsets = [0, 32], sizes = [4, 32], strides = [1, 1]} : vector<4x128xf32> to vector<4x32xf32>
    %91 = arith.negf %90 : vector<4x32xf32>
    %92 = math.exp %91 : vector<4x32xf32>
    %cst_32 = arith.constant 1.000000e+00 : f32
    %93 = vector.broadcast %cst_32 : f32 to vector<4x32xf32>
    %94 = arith.addf %93, %92 : vector<4x32xf32>
    %95 = arith.divf %93, %94 : vector<4x32xf32>
    %96 = vector.extract_strided_slice %83 {offsets = [0, 64], sizes = [4, 32], strides = [1, 1]} : vector<4x128xf32> to vector<4x32xf32>
    %97 = math.tanh %96 : vector<4x32xf32>
    %98 = vector.extract_strided_slice %83 {offsets = [0, 96], sizes = [4, 32], strides = [1, 1]} : vector<4x128xf32> to vector<4x32xf32>
    %99 = arith.negf %98 : vector<4x32xf32>
    %100 = math.exp %99 : vector<4x32xf32>
    %cst_33 = arith.constant 1.000000e+00 : f32
    %101 = vector.broadcast %cst_33 : f32 to vector<4x32xf32>
    %102 = arith.addf %101, %100 : vector<4x32xf32>
    %103 = arith.divf %101, %102 : vector<4x32xf32>
    %104 = arith.mulf %95, %43 : vector<4x32xf32>
    %105 = arith.mulf %89, %97 : vector<4x32xf32>
    %106 = arith.addf %104, %105 : vector<4x32xf32>
    %107 = math.tanh %106 : vector<4x32xf32>
    %108 = arith.mulf %103, %107 : vector<4x32xf32>
    %109 = tpu.concatenate %108, %73 in 1 : vector<4x32xf32>, vector<4x32xf32> -> vector<4x64xf32>
    %cst_34 = arith.constant dense<0.000000e+00> : vector<4x128xf32>
    %110 = tpu.matmul %109, %4, %cst_34 {dimension_numbers = #tpu.dot_dimension_numbers<[1], [0], [0], [1], [0, 0, 1, 1], [], []>} : vector<4x64xf32>, vector<64x128xf32>, vector<4x128xf32> -> vector<4x128xf32>
    %111 = arith.addf %110, %10 : vector<4x128xf32>
    %112 = vector.extract_strided_slice %111 {offsets = [0, 0], sizes = [4, 32], strides = [1, 1]} : vector<4x128xf32> to vector<4x32xf32>
    %113 = arith.negf %112 : vector<4x32xf32>
    %114 = math.exp %113 : vector<4x32xf32>
    %cst_35 = arith.constant 1.000000e+00 : f32
    %115 = vector.broadcast %cst_35 : f32 to vector<4x32xf32>
    %116 = arith.addf %115, %114 : vector<4x32xf32>
    %117 = arith.divf %115, %116 : vector<4x32xf32>
    %118 = vector.extract_strided_slice %111 {offsets = [0, 32], sizes = [4, 32], strides = [1, 1]} : vector<4x128xf32> to vector<4x32xf32>
    %119 = arith.negf %118 : vector<4x32xf32>
    %120 = math.exp %119 : vector<4x32xf32>
    %cst_36 = arith.constant 1.000000e+00 : f32
    %121 = vector.broadcast %cst_36 : f32 to vector<4x32xf32>
    %122 = arith.addf %121, %120 : vector<4x32xf32>
    %123 = arith.divf %121, %122 : vector<4x32xf32>
    %124 = vector.extract_strided_slice %111 {offsets = [0, 64], sizes = [4, 32], strides = [1, 1]} : vector<4x128xf32> to vector<4x32xf32>
    %125 = math.tanh %124 : vector<4x32xf32>
    %126 = vector.extract_strided_slice %111 {offsets = [0, 96], sizes = [4, 32], strides = [1, 1]} : vector<4x128xf32> to vector<4x32xf32>
    %127 = arith.negf %126 : vector<4x32xf32>
    %128 = math.exp %127 : vector<4x32xf32>
    %cst_37 = arith.constant 1.000000e+00 : f32
    %129 = vector.broadcast %cst_37 : f32 to vector<4x32xf32>
    %130 = arith.addf %129, %128 : vector<4x32xf32>
    %131 = arith.divf %129, %130 : vector<4x32xf32>
    %132 = arith.mulf %123, %71 : vector<4x32xf32>
    %133 = arith.mulf %117, %125 : vector<4x32xf32>
    %134 = arith.addf %132, %133 : vector<4x32xf32>
    %135 = math.tanh %134 : vector<4x32xf32>
    %136 = arith.mulf %131, %135 : vector<4x32xf32>
    %137 = arith.index_cast %c1_i32 : i32 to index
    %c0_38 = arith.constant 0 : index
    %c0_39 = arith.constant 0 : index
    %138 = vector.load %arg6[%137, %c0_38, %c0_39] : memref<8x4x32xf32, #tpu.memory_space<vmem>>, vector<1x4x32xf32>
    %139 = vector.shape_cast %138 : vector<1x4x32xf32> to vector<4x32xf32>
    %140 = vector.shape_cast %136 : vector<4x32xf32> to vector<1x4x32xf32>
    tpu.vector_store %arg6[%137, %c0_38, %c0_39], %140 {strides = array<i32>} : memref<8x4x32xf32, #tpu.memory_space<vmem>>, vector<1x4x32xf32>,
    %c2_i32 = arith.constant 2 : i32
    %141 = arith.index_cast %c2_i32 : i32 to index
    %c0_40 = arith.constant 0 : index
    %c0_41 = arith.constant 0 : index
    %142 = vector.load %arg1[%141, %c0_40, %c0_41] : memref<8x4x16xf32, #tpu.memory_space<vmem>>, vector<1x4x16xf32>
    %143 = vector.shape_cast %142 : vector<1x4x16xf32> to vector<4x16xf32>
    %144 = tpu.concatenate %143, %108 in 1 : vector<4x16xf32>, vector<4x32xf32> -> vector<4x48xf32>
    %cst_42 = arith.constant dense<0.000000e+00> : vector<4x128xf32>
    %145 = tpu.matmul %144, %3, %cst_42 {dimension_numbers = #tpu.dot_dimension_numbers<[1], [0], [0], [1], [0, 0, 1, 1], [], []>} : vector<4x48xf32>, vector<48x128xf32>, vector<4x128xf32> -> vector<4x128xf32>
    %146 = arith.addf %145, %7 : vector<4x128xf32>
    %147 = vector.extract_strided_slice %146 {offsets = [0, 0], sizes = [4, 32], strides = [1, 1]} : vector<4x128xf32> to vector<4x32xf32>
    %148 = arith.negf %147 : vector<4x32xf32>
    %149 = math.exp %148 : vector<4x32xf32>
    %cst_43 = arith.constant 1.000000e+00 : f32
    %150 = vector.broadcast %cst_43 : f32 to vector<4x32xf32>
    %151 = arith.addf %150, %149 : vector<4x32xf32>
    %152 = arith.divf %150, %151 : vector<4x32xf32>
    %153 = vector.extract_strided_slice %146 {offsets = [0, 32], sizes = [4, 32], strides = [1, 1]} : vector<4x128xf32> to vector<4x32xf32>
    %154 = arith.negf %153 : vector<4x32xf32>
    %155 = math.exp %154 : vector<4x32xf32>
    %cst_44 = arith.constant 1.000000e+00 : f32
    %156 = vector.broadcast %cst_44 : f32 to vector<4x32xf32>
    %157 = arith.addf %156, %155 : vector<4x32xf32>
    %158 = arith.divf %156, %157 : vector<4x32xf32>
    %159 = vector.extract_strided_slice %146 {offsets = [0, 64], sizes = [4, 32], strides = [1, 1]} : vector<4x128xf32> to vector<4x32xf32>
    %160 = math.tanh %159 : vector<4x32xf32>
    %161 = vector.extract_strided_slice %146 {offsets = [0, 96], sizes = [4, 32], strides = [1, 1]} : vector<4x128xf32> to vector<4x32xf32>
    %162 = arith.negf %161 : vector<4x32xf32>
    %163 = math.exp %162 : vector<4x32xf32>
    %cst_45 = arith.constant 1.000000e+00 : f32
    %164 = vector.broadcast %cst_45 : f32 to vector<4x32xf32>
    %165 = arith.addf %164, %163 : vector<4x32xf32>
    %166 = arith.divf %164, %165 : vector<4x32xf32>
    %167 = arith.mulf %158, %106 : vector<4x32xf32>
    %168 = arith.mulf %152, %160 : vector<4x32xf32>
    %169 = arith.addf %167, %168 : vector<4x32xf32>
    %170 = math.tanh %169 : vector<4x32xf32>
    %171 = arith.mulf %166, %170 : vector<4x32xf32>
    %172 = tpu.concatenate %171, %136 in 1 : vector<4x32xf32>, vector<4x32xf32> -> vector<4x64xf32>
    %cst_46 = arith.constant dense<0.000000e+00> : vector<4x128xf32>
    %173 = tpu.matmul %172, %4, %cst_46 {dimension_numbers = #tpu.dot_dimension_numbers<[1], [0], [0], [1], [0, 0, 1, 1], [], []>} : vector<4x64xf32>, vector<64x128xf32>, vector<4x128xf32> -> vector<4x128xf32>
    %174 = arith.addf %173, %10 : vector<4x128xf32>
    %175 = vector.extract_strided_slice %174 {offsets = [0, 0], sizes = [4, 32], strides = [1, 1]} : vector<4x128xf32> to vector<4x32xf32>
    %176 = arith.negf %175 : vector<4x32xf32>
    %177 = math.exp %176 : vector<4x32xf32>
    %cst_47 = arith.constant 1.000000e+00 : f32
    %178 = vector.broadcast %cst_47 : f32 to vector<4x32xf32>
    %179 = arith.addf %178, %177 : vector<4x32xf32>
    %180 = arith.divf %178, %179 : vector<4x32xf32>
    %181 = vector.extract_strided_slice %174 {offsets = [0, 32], sizes = [4, 32], strides = [1, 1]} : vector<4x128xf32> to vector<4x32xf32>
    %182 = arith.negf %181 : vector<4x32xf32>
    %183 = math.exp %182 : vector<4x32xf32>
    %cst_48 = arith.constant 1.000000e+00 : f32
    %184 = vector.broadcast %cst_48 : f32 to vector<4x32xf32>
    %185 = arith.addf %184, %183 : vector<4x32xf32>
    %186 = arith.divf %184, %185 : vector<4x32xf32>
    %187 = vector.extract_strided_slice %174 {offsets = [0, 64], sizes = [4, 32], strides = [1, 1]} : vector<4x128xf32> to vector<4x32xf32>
    %188 = math.tanh %187 : vector<4x32xf32>
    %189 = vector.extract_strided_slice %174 {offsets = [0, 96], sizes = [4, 32], strides = [1, 1]} : vector<4x128xf32> to vector<4x32xf32>
    %190 = arith.negf %189 : vector<4x32xf32>
    %191 = math.exp %190 : vector<4x32xf32>
    %cst_49 = arith.constant 1.000000e+00 : f32
    %192 = vector.broadcast %cst_49 : f32 to vector<4x32xf32>
    %193 = arith.addf %192, %191 : vector<4x32xf32>
    %194 = arith.divf %192, %193 : vector<4x32xf32>
    %195 = arith.mulf %186, %134 : vector<4x32xf32>
    %196 = arith.mulf %180, %188 : vector<4x32xf32>
    %197 = arith.addf %195, %196 : vector<4x32xf32>
    %198 = math.tanh %197 : vector<4x32xf32>
    %199 = arith.mulf %194, %198 : vector<4x32xf32>
    %200 = arith.index_cast %c2_i32 : i32 to index
    %c0_50 = arith.constant 0 : index
    %c0_51 = arith.constant 0 : index
    %201 = vector.load %arg6[%200, %c0_50, %c0_51] : memref<8x4x32xf32, #tpu.memory_space<vmem>>, vector<1x4x32xf32>
    %202 = vector.shape_cast %201 : vector<1x4x32xf32> to vector<4x32xf32>
    %203 = vector.shape_cast %199 : vector<4x32xf32> to vector<1x4x32xf32>
    tpu.vector_store %arg6[%200, %c0_50, %c0_51], %203 {strides = array<i32>} : memref<8x4x32xf32, #tpu.memory_space<vmem>>, vector<1x4x32xf32>,
    %c3_i32 = arith.constant 3 : i32
    %204 = arith.index_cast %c3_i32 : i32 to index
    %c0_52 = arith.constant 0 : index
    %c0_53 = arith.constant 0 : index
    %205 = vector.load %arg1[%204, %c0_52, %c0_53] : memref<8x4x16xf32, #tpu.memory_space<vmem>>, vector<1x4x16xf32>
    %206 = vector.shape_cast %205 : vector<1x4x16xf32> to vector<4x16xf32>
    %207 = tpu.concatenate %206, %171 in 1 : vector<4x16xf32>, vector<4x32xf32> -> vector<4x48xf32>
    %cst_54 = arith.constant dense<0.000000e+00> : vector<4x128xf32>
    %208 = tpu.matmul %207, %3, %cst_54 {dimension_numbers = #tpu.dot_dimension_numbers<[1], [0], [0], [1], [0, 0, 1, 1], [], []>} : vector<4x48xf32>, vector<48x128xf32>, vector<4x128xf32> -> vector<4x128xf32>
    %209 = arith.addf %208, %7 : vector<4x128xf32>
    %210 = vector.extract_strided_slice %209 {offsets = [0, 0], sizes = [4, 32], strides = [1, 1]} : vector<4x128xf32> to vector<4x32xf32>
    %211 = arith.negf %210 : vector<4x32xf32>
    %212 = math.exp %211 : vector<4x32xf32>
    %cst_55 = arith.constant 1.000000e+00 : f32
    %213 = vector.broadcast %cst_55 : f32 to vector<4x32xf32>
    %214 = arith.addf %213, %212 : vector<4x32xf32>
    %215 = arith.divf %213, %214 : vector<4x32xf32>
    %216 = vector.extract_strided_slice %209 {offsets = [0, 32], sizes = [4, 32], strides = [1, 1]} : vector<4x128xf32> to vector<4x32xf32>
    %217 = arith.negf %216 : vector<4x32xf32>
    %218 = math.exp %217 : vector<4x32xf32>
    %cst_56 = arith.constant 1.000000e+00 : f32
    %219 = vector.broadcast %cst_56 : f32 to vector<4x32xf32>
    %220 = arith.addf %219, %218 : vector<4x32xf32>
    %221 = arith.divf %219, %220 : vector<4x32xf32>
    %222 = vector.extract_strided_slice %209 {offsets = [0, 64], sizes = [4, 32], strides = [1, 1]} : vector<4x128xf32> to vector<4x32xf32>
    %223 = math.tanh %222 : vector<4x32xf32>
    %224 = vector.extract_strided_slice %209 {offsets = [0, 96], sizes = [4, 32], strides = [1, 1]} : vector<4x128xf32> to vector<4x32xf32>
    %225 = arith.negf %224 : vector<4x32xf32>
    %226 = math.exp %225 : vector<4x32xf32>
    %cst_57 = arith.constant 1.000000e+00 : f32
    %227 = vector.broadcast %cst_57 : f32 to vector<4x32xf32>
    %228 = arith.addf %227, %226 : vector<4x32xf32>
    %229 = arith.divf %227, %228 : vector<4x32xf32>
    %230 = arith.mulf %221, %169 : vector<4x32xf32>
    %231 = arith.mulf %215, %223 : vector<4x32xf32>
    %232 = arith.addf %230, %231 : vector<4x32xf32>
    %233 = math.tanh %232 : vector<4x32xf32>
    %234 = arith.mulf %229, %233 : vector<4x32xf32>
    %235 = tpu.concatenate %234, %199 in 1 : vector<4x32xf32>, vector<4x32xf32> -> vector<4x64xf32>
    %cst_58 = arith.constant dense<0.000000e+00> : vector<4x128xf32>
    %236 = tpu.matmul %235, %4, %cst_58 {dimension_numbers = #tpu.dot_dimension_numbers<[1], [0], [0], [1], [0, 0, 1, 1], [], []>} : vector<4x64xf32>, vector<64x128xf32>, vector<4x128xf32> -> vector<4x128xf32>
    %237 = arith.addf %236, %10 : vector<4x128xf32>
    %238 = vector.extract_strided_slice %237 {offsets = [0, 0], sizes = [4, 32], strides = [1, 1]} : vector<4x128xf32> to vector<4x32xf32>
    %239 = arith.negf %238 : vector<4x32xf32>
    %240 = math.exp %239 : vector<4x32xf32>
    %cst_59 = arith.constant 1.000000e+00 : f32
    %241 = vector.broadcast %cst_59 : f32 to vector<4x32xf32>
    %242 = arith.addf %241, %240 : vector<4x32xf32>
    %243 = arith.divf %241, %242 : vector<4x32xf32>
    %244 = vector.extract_strided_slice %237 {offsets = [0, 32], sizes = [4, 32], strides = [1, 1]} : vector<4x128xf32> to vector<4x32xf32>
    %245 = arith.negf %244 : vector<4x32xf32>
    %246 = math.exp %245 : vector<4x32xf32>
    %cst_60 = arith.constant 1.000000e+00 : f32
    %247 = vector.broadcast %cst_60 : f32 to vector<4x32xf32>
    %248 = arith.addf %247, %246 : vector<4x32xf32>
    %249 = arith.divf %247, %248 : vector<4x32xf32>
    %250 = vector.extract_strided_slice %237 {offsets = [0, 64], sizes = [4, 32], strides = [1, 1]} : vector<4x128xf32> to vector<4x32xf32>
    %251 = math.tanh %250 : vector<4x32xf32>
    %252 = vector.extract_strided_slice %237 {offsets = [0, 96], sizes = [4, 32], strides = [1, 1]} : vector<4x128xf32> to vector<4x32xf32>
    %253 = arith.negf %252 : vector<4x32xf32>
    %254 = math.exp %253 : vector<4x32xf32>
    %cst_61 = arith.constant 1.000000e+00 : f32
    %255 = vector.broadcast %cst_61 : f32 to vector<4x32xf32>
    %256 = arith.addf %255, %254 : vector<4x32xf32>
    %257 = arith.divf %255, %256 : vector<4x32xf32>
    %258 = arith.mulf %249, %197 : vector<4x32xf32>
    %259 = arith.mulf %243, %251 : vector<4x32xf32>
    %260 = arith.addf %258, %259 : vector<4x32xf32>
    %261 = math.tanh %260 : vector<4x32xf32>
    %262 = arith.mulf %257, %261 : vector<4x32xf32>
    %263 = arith.index_cast %c3_i32 : i32 to index
    %c0_62 = arith.constant 0 : index
    %c0_63 = arith.constant 0 : index
    %264 = vector.load %arg6[%263, %c0_62, %c0_63] : memref<8x4x32xf32, #tpu.memory_space<vmem>>, vector<1x4x32xf32>
    %265 = vector.shape_cast %264 : vector<1x4x32xf32> to vector<4x32xf32>
    %266 = vector.shape_cast %262 : vector<4x32xf32> to vector<1x4x32xf32>
    tpu.vector_store %arg6[%263, %c0_62, %c0_63], %266 {strides = array<i32>} : memref<8x4x32xf32, #tpu.memory_space<vmem>>, vector<1x4x32xf32>,
    %c4_i32 = arith.constant 4 : i32
    %267 = arith.index_cast %c4_i32 : i32 to index
    %c0_64 = arith.constant 0 : index
    %c0_65 = arith.constant 0 : index
    %268 = vector.load %arg1[%267, %c0_64, %c0_65] : memref<8x4x16xf32, #tpu.memory_space<vmem>>, vector<1x4x16xf32>
    %269 = vector.shape_cast %268 : vector<1x4x16xf32> to vector<4x16xf32>
    %270 = tpu.concatenate %269, %234 in 1 : vector<4x16xf32>, vector<4x32xf32> -> vector<4x48xf32>
    %cst_66 = arith.constant dense<0.000000e+00> : vector<4x128xf32>
    %271 = tpu.matmul %270, %3, %cst_66 {dimension_numbers = #tpu.dot_dimension_numbers<[1], [0], [0], [1], [0, 0, 1, 1], [], []>} : vector<4x48xf32>, vector<48x128xf32>, vector<4x128xf32> -> vector<4x128xf32>
    %272 = arith.addf %271, %7 : vector<4x128xf32>
    %273 = vector.extract_strided_slice %272 {offsets = [0, 0], sizes = [4, 32], strides = [1, 1]} : vector<4x128xf32> to vector<4x32xf32>
    %274 = arith.negf %273 : vector<4x32xf32>
    %275 = math.exp %274 : vector<4x32xf32>
    %cst_67 = arith.constant 1.000000e+00 : f32
    %276 = vector.broadcast %cst_67 : f32 to vector<4x32xf32>
    %277 = arith.addf %276, %275 : vector<4x32xf32>
    %278 = arith.divf %276, %277 : vector<4x32xf32>
    %279 = vector.extract_strided_slice %272 {offsets = [0, 32], sizes = [4, 32], strides = [1, 1]} : vector<4x128xf32> to vector<4x32xf32>
    %280 = arith.negf %279 : vector<4x32xf32>
    %281 = math.exp %280 : vector<4x32xf32>
    %cst_68 = arith.constant 1.000000e+00 : f32
    %282 = vector.broadcast %cst_68 : f32 to vector<4x32xf32>
    %283 = arith.addf %282, %281 : vector<4x32xf32>
    %284 = arith.divf %282, %283 : vector<4x32xf32>
    %285 = vector.extract_strided_slice %272 {offsets = [0, 64], sizes = [4, 32], strides = [1, 1]} : vector<4x128xf32> to vector<4x32xf32>
    %286 = math.tanh %285 : vector<4x32xf32>
    %287 = vector.extract_strided_slice %272 {offsets = [0, 96], sizes = [4, 32], strides = [1, 1]} : vector<4x128xf32> to vector<4x32xf32>
    %288 = arith.negf %287 : vector<4x32xf32>
    %289 = math.exp %288 : vector<4x32xf32>
    %cst_69 = arith.constant 1.000000e+00 : f32
    %290 = vector.broadcast %cst_69 : f32 to vector<4x32xf32>
    %291 = arith.addf %290, %289 : vector<4x32xf32>
    %292 = arith.divf %290, %291 : vector<4x32xf32>
    %293 = arith.mulf %284, %232 : vector<4x32xf32>
    %294 = arith.mulf %278, %286 : vector<4x32xf32>
    %295 = arith.addf %293, %294 : vector<4x32xf32>
    %296 = math.tanh %295 : vector<4x32xf32>
    %297 = arith.mulf %292, %296 : vector<4x32xf32>
    %298 = tpu.concatenate %297, %262 in 1 : vector<4x32xf32>, vector<4x32xf32> -> vector<4x64xf32>
    %cst_70 = arith.constant dense<0.000000e+00> : vector<4x128xf32>
    %299 = tpu.matmul %298, %4, %cst_70 {dimension_numbers = #tpu.dot_dimension_numbers<[1], [0], [0], [1], [0, 0, 1, 1], [], []>} : vector<4x64xf32>, vector<64x128xf32>, vector<4x128xf32> -> vector<4x128xf32>
    %300 = arith.addf %299, %10 : vector<4x128xf32>
    %301 = vector.extract_strided_slice %300 {offsets = [0, 0], sizes = [4, 32], strides = [1, 1]} : vector<4x128xf32> to vector<4x32xf32>
    %302 = arith.negf %301 : vector<4x32xf32>
    %303 = math.exp %302 : vector<4x32xf32>
    %cst_71 = arith.constant 1.000000e+00 : f32
    %304 = vector.broadcast %cst_71 : f32 to vector<4x32xf32>
    %305 = arith.addf %304, %303 : vector<4x32xf32>
    %306 = arith.divf %304, %305 : vector<4x32xf32>
    %307 = vector.extract_strided_slice %300 {offsets = [0, 32], sizes = [4, 32], strides = [1, 1]} : vector<4x128xf32> to vector<4x32xf32>
    %308 = arith.negf %307 : vector<4x32xf32>
    %309 = math.exp %308 : vector<4x32xf32>
    %cst_72 = arith.constant 1.000000e+00 : f32
    %310 = vector.broadcast %cst_72 : f32 to vector<4x32xf32>
    %311 = arith.addf %310, %309 : vector<4x32xf32>
    %312 = arith.divf %310, %311 : vector<4x32xf32>
    %313 = vector.extract_strided_slice %300 {offsets = [0, 64], sizes = [4, 32], strides = [1, 1]} : vector<4x128xf32> to vector<4x32xf32>
    %314 = math.tanh %313 : vector<4x32xf32>
    %315 = vector.extract_strided_slice %300 {offsets = [0, 96], sizes = [4, 32], strides = [1, 1]} : vector<4x128xf32> to vector<4x32xf32>
    %316 = arith.negf %315 : vector<4x32xf32>
    %317 = math.exp %316 : vector<4x32xf32>
    %cst_73 = arith.constant 1.000000e+00 : f32
    %318 = vector.broadcast %cst_73 : f32 to vector<4x32xf32>
    %319 = arith.addf %318, %317 : vector<4x32xf32>
    %320 = arith.divf %318, %319 : vector<4x32xf32>
    %321 = arith.mulf %312, %260 : vector<4x32xf32>
    %322 = arith.mulf %306, %314 : vector<4x32xf32>
    %323 = arith.addf %321, %322 : vector<4x32xf32>
    %324 = math.tanh %323 : vector<4x32xf32>
    %325 = arith.mulf %320, %324 : vector<4x32xf32>
    %326 = arith.index_cast %c4_i32 : i32 to index
    %c0_74 = arith.constant 0 : index
    %c0_75 = arith.constant 0 : index
    %327 = vector.load %arg6[%326, %c0_74, %c0_75] : memref<8x4x32xf32, #tpu.memory_space<vmem>>, vector<1x4x32xf32>
    %328 = vector.shape_cast %327 : vector<1x4x32xf32> to vector<4x32xf32>
    %329 = vector.shape_cast %325 : vector<4x32xf32> to vector<1x4x32xf32>
    tpu.vector_store %arg6[%326, %c0_74, %c0_75], %329 {strides = array<i32>} : memref<8x4x32xf32, #tpu.memory_space<vmem>>, vector<1x4x32xf32>,
    %c5_i32 = arith.constant 5 : i32
    %330 = arith.index_cast %c5_i32 : i32 to index
    %c0_76 = arith.constant 0 : index
    %c0_77 = arith.constant 0 : index
    %331 = vector.load %arg1[%330, %c0_76, %c0_77] : memref<8x4x16xf32, #tpu.memory_space<vmem>>, vector<1x4x16xf32>
    %332 = vector.shape_cast %331 : vector<1x4x16xf32> to vector<4x16xf32>
    %333 = tpu.concatenate %332, %297 in 1 : vector<4x16xf32>, vector<4x32xf32> -> vector<4x48xf32>
    %cst_78 = arith.constant dense<0.000000e+00> : vector<4x128xf32>
    %334 = tpu.matmul %333, %3, %cst_78 {dimension_numbers = #tpu.dot_dimension_numbers<[1], [0], [0], [1], [0, 0, 1, 1], [], []>} : vector<4x48xf32>, vector<48x128xf32>, vector<4x128xf32> -> vector<4x128xf32>
    %335 = arith.addf %334, %7 : vector<4x128xf32>
    %336 = vector.extract_strided_slice %335 {offsets = [0, 0], sizes = [4, 32], strides = [1, 1]} : vector<4x128xf32> to vector<4x32xf32>
    %337 = arith.negf %336 : vector<4x32xf32>
    %338 = math.exp %337 : vector<4x32xf32>
    %cst_79 = arith.constant 1.000000e+00 : f32
    %339 = vector.broadcast %cst_79 : f32 to vector<4x32xf32>
    %340 = arith.addf %339, %338 : vector<4x32xf32>
    %341 = arith.divf %339, %340 : vector<4x32xf32>
    %342 = vector.extract_strided_slice %335 {offsets = [0, 32], sizes = [4, 32], strides = [1, 1]} : vector<4x128xf32> to vector<4x32xf32>
    %343 = arith.negf %342 : vector<4x32xf32>
    %344 = math.exp %343 : vector<4x32xf32>
    %cst_80 = arith.constant 1.000000e+00 : f32
    %345 = vector.broadcast %cst_80 : f32 to vector<4x32xf32>
    %346 = arith.addf %345, %344 : vector<4x32xf32>
    %347 = arith.divf %345, %346 : vector<4x32xf32>
    %348 = vector.extract_strided_slice %335 {offsets = [0, 64], sizes = [4, 32], strides = [1, 1]} : vector<4x128xf32> to vector<4x32xf32>
    %349 = math.tanh %348 : vector<4x32xf32>
    %350 = vector.extract_strided_slice %335 {offsets = [0, 96], sizes = [4, 32], strides = [1, 1]} : vector<4x128xf32> to vector<4x32xf32>
    %351 = arith.negf %350 : vector<4x32xf32>
    %352 = math.exp %351 : vector<4x32xf32>
    %cst_81 = arith.constant 1.000000e+00 : f32
    %353 = vector.broadcast %cst_81 : f32 to vector<4x32xf32>
    %354 = arith.addf %353, %352 : vector<4x32xf32>
    %355 = arith.divf %353, %354 : vector<4x32xf32>
    %356 = arith.mulf %347, %295 : vector<4x32xf32>
    %357 = arith.mulf %341, %349 : vector<4x32xf32>
    %358 = arith.addf %356, %357 : vector<4x32xf32>
    %359 = math.tanh %358 : vector<4x32xf32>
    %360 = arith.mulf %355, %359 : vector<4x32xf32>
    %361 = tpu.concatenate %360, %325 in 1 : vector<4x32xf32>, vector<4x32xf32> -> vector<4x64xf32>
    %cst_82 = arith.constant dense<0.000000e+00> : vector<4x128xf32>
    %362 = tpu.matmul %361, %4, %cst_82 {dimension_numbers = #tpu.dot_dimension_numbers<[1], [0], [0], [1], [0, 0, 1, 1], [], []>} : vector<4x64xf32>, vector<64x128xf32>, vector<4x128xf32> -> vector<4x128xf32>
    %363 = arith.addf %362, %10 : vector<4x128xf32>
    %364 = vector.extract_strided_slice %363 {offsets = [0, 0], sizes = [4, 32], strides = [1, 1]} : vector<4x128xf32> to vector<4x32xf32>
    %365 = arith.negf %364 : vector<4x32xf32>
    %366 = math.exp %365 : vector<4x32xf32>
    %cst_83 = arith.constant 1.000000e+00 : f32
    %367 = vector.broadcast %cst_83 : f32 to vector<4x32xf32>
    %368 = arith.addf %367, %366 : vector<4x32xf32>
    %369 = arith.divf %367, %368 : vector<4x32xf32>
    %370 = vector.extract_strided_slice %363 {offsets = [0, 32], sizes = [4, 32], strides = [1, 1]} : vector<4x128xf32> to vector<4x32xf32>
    %371 = arith.negf %370 : vector<4x32xf32>
    %372 = math.exp %371 : vector<4x32xf32>
    %cst_84 = arith.constant 1.000000e+00 : f32
    %373 = vector.broadcast %cst_84 : f32 to vector<4x32xf32>
    %374 = arith.addf %373, %372 : vector<4x32xf32>
    %375 = arith.divf %373, %374 : vector<4x32xf32>
    %376 = vector.extract_strided_slice %363 {offsets = [0, 64], sizes = [4, 32], strides = [1, 1]} : vector<4x128xf32> to vector<4x32xf32>
    %377 = math.tanh %376 : vector<4x32xf32>
    %378 = vector.extract_strided_slice %363 {offsets = [0, 96], sizes = [4, 32], strides = [1, 1]} : vector<4x128xf32> to vector<4x32xf32>
    %379 = arith.negf %378 : vector<4x32xf32>
    %380 = math.exp %379 : vector<4x32xf32>
    %cst_85 = arith.constant 1.000000e+00 : f32
    %381 = vector.broadcast %cst_85 : f32 to vector<4x32xf32>
    %382 = arith.addf %381, %380 : vector<4x32xf32>
    %383 = arith.divf %381, %382 : vector<4x32xf32>
    %384 = arith.mulf %375, %323 : vector<4x32xf32>
    %385 = arith.mulf %369, %377 : vector<4x32xf32>
    %386 = arith.addf %384, %385 : vector<4x32xf32>
    %387 = math.tanh %386 : vector<4x32xf32>
    %388 = arith.mulf %383, %387 : vector<4x32xf32>
    %389 = arith.index_cast %c5_i32 : i32 to index
    %c0_86 = arith.constant 0 : index
    %c0_87 = arith.constant 0 : index
    %390 = vector.load %arg6[%389, %c0_86, %c0_87] : memref<8x4x32xf32, #tpu.memory_space<vmem>>, vector<1x4x32xf32>
    %391 = vector.shape_cast %390 : vector<1x4x32xf32> to vector<4x32xf32>
    %392 = vector.shape_cast %388 : vector<4x32xf32> to vector<1x4x32xf32>
    tpu.vector_store %arg6[%389, %c0_86, %c0_87], %392 {strides = array<i32>} : memref<8x4x32xf32, #tpu.memory_space<vmem>>, vector<1x4x32xf32>,
    %c6_i32 = arith.constant 6 : i32
    %393 = arith.index_cast %c6_i32 : i32 to index
    %c0_88 = arith.constant 0 : index
    %c0_89 = arith.constant 0 : index
    %394 = vector.load %arg1[%393, %c0_88, %c0_89] : memref<8x4x16xf32, #tpu.memory_space<vmem>>, vector<1x4x16xf32>
    %395 = vector.shape_cast %394 : vector<1x4x16xf32> to vector<4x16xf32>
    %396 = tpu.concatenate %395, %360 in 1 : vector<4x16xf32>, vector<4x32xf32> -> vector<4x48xf32>
    %cst_90 = arith.constant dense<0.000000e+00> : vector<4x128xf32>
    %397 = tpu.matmul %396, %3, %cst_90 {dimension_numbers = #tpu.dot_dimension_numbers<[1], [0], [0], [1], [0, 0, 1, 1], [], []>} : vector<4x48xf32>, vector<48x128xf32>, vector<4x128xf32> -> vector<4x128xf32>
    %398 = arith.addf %397, %7 : vector<4x128xf32>
    %399 = vector.extract_strided_slice %398 {offsets = [0, 0], sizes = [4, 32], strides = [1, 1]} : vector<4x128xf32> to vector<4x32xf32>
    %400 = arith.negf %399 : vector<4x32xf32>
    %401 = math.exp %400 : vector<4x32xf32>
    %cst_91 = arith.constant 1.000000e+00 : f32
    %402 = vector.broadcast %cst_91 : f32 to vector<4x32xf32>
    %403 = arith.addf %402, %401 : vector<4x32xf32>
    %404 = arith.divf %402, %403 : vector<4x32xf32>
    %405 = vector.extract_strided_slice %398 {offsets = [0, 32], sizes = [4, 32], strides = [1, 1]} : vector<4x128xf32> to vector<4x32xf32>
    %406 = arith.negf %405 : vector<4x32xf32>
    %407 = math.exp %406 : vector<4x32xf32>
    %cst_92 = arith.constant 1.000000e+00 : f32
    %408 = vector.broadcast %cst_92 : f32 to vector<4x32xf32>
    %409 = arith.addf %408, %407 : vector<4x32xf32>
    %410 = arith.divf %408, %409 : vector<4x32xf32>
    %411 = vector.extract_strided_slice %398 {offsets = [0, 64], sizes = [4, 32], strides = [1, 1]} : vector<4x128xf32> to vector<4x32xf32>
    %412 = math.tanh %411 : vector<4x32xf32>
    %413 = vector.extract_strided_slice %398 {offsets = [0, 96], sizes = [4, 32], strides = [1, 1]} : vector<4x128xf32> to vector<4x32xf32>
    %414 = arith.negf %413 : vector<4x32xf32>
    %415 = math.exp %414 : vector<4x32xf32>
    %cst_93 = arith.constant 1.000000e+00 : f32
    %416 = vector.broadcast %cst_93 : f32 to vector<4x32xf32>
    %417 = arith.addf %416, %415 : vector<4x32xf32>
    %418 = arith.divf %416, %417 : vector<4x32xf32>
    %419 = arith.mulf %410, %358 : vector<4x32xf32>
    %420 = arith.mulf %404, %412 : vector<4x32xf32>
    %421 = arith.addf %419, %420 : vector<4x32xf32>
    %422 = math.tanh %421 : vector<4x32xf32>
    %423 = arith.mulf %418, %422 : vector<4x32xf32>
    %424 = tpu.concatenate %423, %388 in 1 : vector<4x32xf32>, vector<4x32xf32> -> vector<4x64xf32>
    %cst_94 = arith.constant dense<0.000000e+00> : vector<4x128xf32>
    %425 = tpu.matmul %424, %4, %cst_94 {dimension_numbers = #tpu.dot_dimension_numbers<[1], [0], [0], [1], [0, 0, 1, 1], [], []>} : vector<4x64xf32>, vector<64x128xf32>, vector<4x128xf32> -> vector<4x128xf32>
    %426 = arith.addf %425, %10 : vector<4x128xf32>
    %427 = vector.extract_strided_slice %426 {offsets = [0, 0], sizes = [4, 32], strides = [1, 1]} : vector<4x128xf32> to vector<4x32xf32>
    %428 = arith.negf %427 : vector<4x32xf32>
    %429 = math.exp %428 : vector<4x32xf32>
    %cst_95 = arith.constant 1.000000e+00 : f32
    %430 = vector.broadcast %cst_95 : f32 to vector<4x32xf32>
    %431 = arith.addf %430, %429 : vector<4x32xf32>
    %432 = arith.divf %430, %431 : vector<4x32xf32>
    %433 = vector.extract_strided_slice %426 {offsets = [0, 32], sizes = [4, 32], strides = [1, 1]} : vector<4x128xf32> to vector<4x32xf32>
    %434 = arith.negf %433 : vector<4x32xf32>
    %435 = math.exp %434 : vector<4x32xf32>
    %cst_96 = arith.constant 1.000000e+00 : f32
    %436 = vector.broadcast %cst_96 : f32 to vector<4x32xf32>
    %437 = arith.addf %436, %435 : vector<4x32xf32>
    %438 = arith.divf %436, %437 : vector<4x32xf32>
    %439 = vector.extract_strided_slice %426 {offsets = [0, 64], sizes = [4, 32], strides = [1, 1]} : vector<4x128xf32> to vector<4x32xf32>
    %440 = math.tanh %439 : vector<4x32xf32>
    %441 = vector.extract_strided_slice %426 {offsets = [0, 96], sizes = [4, 32], strides = [1, 1]} : vector<4x128xf32> to vector<4x32xf32>
    %442 = arith.negf %441 : vector<4x32xf32>
    %443 = math.exp %442 : vector<4x32xf32>
    %cst_97 = arith.constant 1.000000e+00 : f32
    %444 = vector.broadcast %cst_97 : f32 to vector<4x32xf32>
    %445 = arith.addf %444, %443 : vector<4x32xf32>
    %446 = arith.divf %444, %445 : vector<4x32xf32>
    %447 = arith.mulf %438, %386 : vector<4x32xf32>
    %448 = arith.mulf %432, %440 : vector<4x32xf32>
    %449 = arith.addf %447, %448 : vector<4x32xf32>
    %450 = math.tanh %449 : vector<4x32xf32>
    %451 = arith.mulf %446, %450 : vector<4x32xf32>
    %452 = arith.index_cast %c6_i32 : i32 to index
    %c0_98 = arith.constant 0 : index
    %c0_99 = arith.constant 0 : index
    %453 = vector.load %arg6[%452, %c0_98, %c0_99] : memref<8x4x32xf32, #tpu.memory_space<vmem>>, vector<1x4x32xf32>
    %454 = vector.shape_cast %453 : vector<1x4x32xf32> to vector<4x32xf32>
    %455 = vector.shape_cast %451 : vector<4x32xf32> to vector<1x4x32xf32>
    tpu.vector_store %arg6[%452, %c0_98, %c0_99], %455 {strides = array<i32>} : memref<8x4x32xf32, #tpu.memory_space<vmem>>, vector<1x4x32xf32>,
    %c7_i32 = arith.constant 7 : i32
    %456 = arith.index_cast %c7_i32 : i32 to index
    %c0_100 = arith.constant 0 : index
    %c0_101 = arith.constant 0 : index
    %457 = vector.load %arg1[%456, %c0_100, %c0_101] : memref<8x4x16xf32, #tpu.memory_space<vmem>>, vector<1x4x16xf32>
    %458 = vector.shape_cast %457 : vector<1x4x16xf32> to vector<4x16xf32>
    %459 = tpu.concatenate %458, %423 in 1 : vector<4x16xf32>, vector<4x32xf32> -> vector<4x48xf32>
    %cst_102 = arith.constant dense<0.000000e+00> : vector<4x128xf32>
    %460 = tpu.matmul %459, %3, %cst_102 {dimension_numbers = #tpu.dot_dimension_numbers<[1], [0], [0], [1], [0, 0, 1, 1], [], []>} : vector<4x48xf32>, vector<48x128xf32>, vector<4x128xf32> -> vector<4x128xf32>
    %461 = arith.addf %460, %7 : vector<4x128xf32>
    %462 = vector.extract_strided_slice %461 {offsets = [0, 0], sizes = [4, 32], strides = [1, 1]} : vector<4x128xf32> to vector<4x32xf32>
    %463 = arith.negf %462 : vector<4x32xf32>
    %464 = math.exp %463 : vector<4x32xf32>
    %cst_103 = arith.constant 1.000000e+00 : f32
    %465 = vector.broadcast %cst_103 : f32 to vector<4x32xf32>
    %466 = arith.addf %465, %464 : vector<4x32xf32>
    %467 = arith.divf %465, %466 : vector<4x32xf32>
    %468 = vector.extract_strided_slice %461 {offsets = [0, 32], sizes = [4, 32], strides = [1, 1]} : vector<4x128xf32> to vector<4x32xf32>
    %469 = arith.negf %468 : vector<4x32xf32>
    %470 = math.exp %469 : vector<4x32xf32>
    %cst_104 = arith.constant 1.000000e+00 : f32
    %471 = vector.broadcast %cst_104 : f32 to vector<4x32xf32>
    %472 = arith.addf %471, %470 : vector<4x32xf32>
    %473 = arith.divf %471, %472 : vector<4x32xf32>
    %474 = vector.extract_strided_slice %461 {offsets = [0, 64], sizes = [4, 32], strides = [1, 1]} : vector<4x128xf32> to vector<4x32xf32>
    %475 = math.tanh %474 : vector<4x32xf32>
    %476 = vector.extract_strided_slice %461 {offsets = [0, 96], sizes = [4, 32], strides = [1, 1]} : vector<4x128xf32> to vector<4x32xf32>
    %477 = arith.negf %476 : vector<4x32xf32>
    %478 = math.exp %477 : vector<4x32xf32>
    %cst_105 = arith.constant 1.000000e+00 : f32
    %479 = vector.broadcast %cst_105 : f32 to vector<4x32xf32>
    %480 = arith.addf %479, %478 : vector<4x32xf32>
    %481 = arith.divf %479, %480 : vector<4x32xf32>
    %482 = arith.mulf %473, %421 : vector<4x32xf32>
    %483 = arith.mulf %467, %475 : vector<4x32xf32>
    %484 = arith.addf %482, %483 : vector<4x32xf32>
    %485 = math.tanh %484 : vector<4x32xf32>
    %486 = arith.mulf %481, %485 : vector<4x32xf32>
    %487 = tpu.concatenate %486, %451 in 1 : vector<4x32xf32>, vector<4x32xf32> -> vector<4x64xf32>
    %cst_106 = arith.constant dense<0.000000e+00> : vector<4x128xf32>
    %488 = tpu.matmul %487, %4, %cst_106 {dimension_numbers = #tpu.dot_dimension_numbers<[1], [0], [0], [1], [0, 0, 1, 1], [], []>} : vector<4x64xf32>, vector<64x128xf32>, vector<4x128xf32> -> vector<4x128xf32>
    %489 = arith.addf %488, %10 : vector<4x128xf32>
    %490 = vector.extract_strided_slice %489 {offsets = [0, 0], sizes = [4, 32], strides = [1, 1]} : vector<4x128xf32> to vector<4x32xf32>
    %491 = arith.negf %490 : vector<4x32xf32>
    %492 = math.exp %491 : vector<4x32xf32>
    %cst_107 = arith.constant 1.000000e+00 : f32
    %493 = vector.broadcast %cst_107 : f32 to vector<4x32xf32>
    %494 = arith.addf %493, %492 : vector<4x32xf32>
    %495 = arith.divf %493, %494 : vector<4x32xf32>
    %496 = vector.extract_strided_slice %489 {offsets = [0, 32], sizes = [4, 32], strides = [1, 1]} : vector<4x128xf32> to vector<4x32xf32>
    %497 = arith.negf %496 : vector<4x32xf32>
    %498 = math.exp %497 : vector<4x32xf32>
    %cst_108 = arith.constant 1.000000e+00 : f32
    %499 = vector.broadcast %cst_108 : f32 to vector<4x32xf32>
    %500 = arith.addf %499, %498 : vector<4x32xf32>
    %501 = arith.divf %499, %500 : vector<4x32xf32>
    %502 = vector.extract_strided_slice %489 {offsets = [0, 64], sizes = [4, 32], strides = [1, 1]} : vector<4x128xf32> to vector<4x32xf32>
    %503 = math.tanh %502 : vector<4x32xf32>
    %504 = vector.extract_strided_slice %489 {offsets = [0, 96], sizes = [4, 32], strides = [1, 1]} : vector<4x128xf32> to vector<4x32xf32>
    %505 = arith.negf %504 : vector<4x32xf32>
    %506 = math.exp %505 : vector<4x32xf32>
    %cst_109 = arith.constant 1.000000e+00 : f32
    %507 = vector.broadcast %cst_109 : f32 to vector<4x32xf32>
    %508 = arith.addf %507, %506 : vector<4x32xf32>
    %509 = arith.divf %507, %508 : vector<4x32xf32>
    %510 = arith.mulf %501, %449 : vector<4x32xf32>
    %511 = arith.mulf %495, %503 : vector<4x32xf32>
    %512 = arith.addf %510, %511 : vector<4x32xf32>
    %513 = math.tanh %512 : vector<4x32xf32>
    %514 = arith.mulf %509, %513 : vector<4x32xf32>
    %515 = arith.index_cast %c7_i32 : i32 to index
    %c0_110 = arith.constant 0 : index
    %c0_111 = arith.constant 0 : index
    %516 = vector.load %arg6[%515, %c0_110, %c0_111] : memref<8x4x32xf32, #tpu.memory_space<vmem>>, vector<1x4x32xf32>
    %517 = vector.shape_cast %516 : vector<1x4x32xf32> to vector<4x32xf32>
    %518 = vector.shape_cast %514 : vector<4x32xf32> to vector<1x4x32xf32>
    tpu.vector_store %arg6[%515, %c0_110, %c0_111], %518 {strides = array<i32>} : memref<8x4x32xf32, #tpu.memory_space<vmem>>, vector<1x4x32xf32>,
    %c8_i32 = arith.constant 8 : i32
    %c0_112 = arith.constant 0 : index
    %c0_113 = arith.constant 0 : index
    %519 = vector.load %arg7[%c0_112, %c0_113] : memref<4x32xf32, #tpu.memory_space<vmem>>, vector<4x32xf32>
    tpu.vector_store %arg7[%c0_112, %c0_113], %486 {strides = array<i32>} : memref<4x32xf32, #tpu.memory_space<vmem>>, vector<4x32xf32>,
    %c0_114 = arith.constant 0 : index
    %c0_115 = arith.constant 0 : index
    %520 = vector.load %arg8[%c0_114, %c0_115] : memref<4x32xf32, #tpu.memory_space<vmem>>, vector<4x32xf32>
    tpu.vector_store %arg8[%c0_114, %c0_115], %484 {strides = array<i32>} : memref<4x32xf32, #tpu.memory_space<vmem>>, vector<4x32xf32>,
    %c0_116 = arith.constant 0 : index
    %c0_117 = arith.constant 0 : index
    %521 = vector.load %arg9[%c0_116, %c0_117] : memref<4x32xf32, #tpu.memory_space<vmem>>, vector<4x32xf32>
    tpu.vector_store %arg9[%c0_116, %c0_117], %514 {strides = array<i32>} : memref<4x32xf32, #tpu.memory_space<vmem>>, vector<4x32xf32>,
    %c0_118 = arith.constant 0 : index
    %c0_119 = arith.constant 0 : index
    %522 = vector.load %arg10[%c0_118, %c0_119] : memref<4x32xf32, #tpu.memory_space<vmem>>, vector<4x32xf32>
    tpu.vector_store %arg10[%c0_118, %c0_119], %512 {strides = array<i32>} : memref<4x32xf32, #tpu.memory_space<vmem>>, vector<4x32xf32>,
    return
  }
  func.func @transform_0(%arg0: i32) -> (i32, i32, i32) {
    %c0_i32 = arith.constant 0 : i32
    %c0_i32_0 = arith.constant 0 : i32
    %c0_i32_1 = arith.constant 0 : i32
    return %arg0, %c0_i32, %c0_i32_0 : i32, i32, i32
  }
  func.func @transform_1(%arg0: i32) -> (i32, i32) {
    %c0_i32 = arith.constant 0 : i32
    %c0_i32_0 = arith.constant 0 : i32
    %c0_i32_1 = arith.constant 0 : i32
    return %c0_i32, %c0_i32_0 : i32, i32
  }
  func.func @transform_2(%arg0: i32) -> (i32, i32) {
    %c0_i32 = arith.constant 0 : i32
    %c0_i32_0 = arith.constant 0 : i32
    %c0_i32_1 = arith.constant 0 : i32
    return %c0_i32, %c0_i32_0 : i32, i32
  }
  func.func @transform_3(%arg0: i32) -> (i32, i32) {
    %c0_i32 = arith.constant 0 : i32
    %c0_i32_0 = arith.constant 0 : i32
    %c0_i32_1 = arith.constant 0 : i32
    return %c0_i32, %c0_i32_0 : i32, i32
  }
  func.func @transform_4(%arg0: i32) -> (i32, i32) {
    %c0_i32 = arith.constant 0 : i32
    %c0_i32_0 = arith.constant 0 : i32
    %c0_i32_1 = arith.constant 0 : i32
    return %c0_i32, %c0_i32_0 : i32, i32
  }
  func.func @transform_5(%arg0: i32) -> (i32, i32, i32) {
    %c0_i32 = arith.constant 0 : i32
    %c0_i32_0 = arith.constant 0 : i32
    %c0_i32_1 = arith.constant 0 : i32
    return %arg0, %c0_i32, %c0_i32_0 : i32, i32, i32
  }
}

</mosaic_0001>

<bundles_post_ra>
// kernel: lstm_obs_forward.3
= control target key start
LH: loop header
LB: loop body
LE: loop exit
PB: predicated region body
PF: predicated region fallthrough
CT: control target
= control target key end

     0   :  { %vm46_vm0 = vcmask 261120   ;;  %vm172_vm3 = vcmask 523264   ;;  %s700_s2 = inlined_call_operand.vmem [shape: f32[32,64], index: 2, kind: input, shape index: {}]   ;;  %s701_s1 = inlined_call_operand.vmem [shape: f32[32,32], index: 1, kind: input, shape index: {}]   ;;  %s702_s4 = inlined_call_operand.vmem [shape: f32[64,64], index: 4, kind: input, shape index: {}]   ;;  %s703_s6 = inlined_call_operand.vmem [shape: f32[64,128], index: 6, kind: input, shape index: {}]   ;;  %s704_s3 = inlined_call_operand.vmem [shape: f32[1,64], index: 3, kind: input, shape index: {}]   ;;  %s705_s0 = inlined_call_operand.<no memory space> [shape: f32[1], index: 0, kind: input, shape index: {}]   ;;  %s706_s5 = inlined_call_operand.vmem [shape: f32[1,64], index: 5, kind: input, shape index: {}]   ;;  %s707_s7 = inlined_call_operand.vmem [shape: f32[1,128], index: 7, kind: input, shape index: {}]   ;;  %s708_s8 = inlined_call_operand.vmem [shape: f32[32,128], index: 8, kind: output, shape index: {}]  }
   0x1   :  { %v35_v0 = vld [vmem:[%s700_s2] sm:$0xff]  ;;  %v36_v1 = vld [vmem:[%s700_s2 + $0x8] sm:$0xff]  ;;  %v37_v2 = vld [vmem:[%s700_s2 + $0x10] sm:$0xff]  ;;  %v148_v30 = vstv %s705_s0 }
   0x2   :  { %v507_v3 = vpack.c.bf16 %v36_v1, %v35_v0  ;;  %v38_v4 = vld [vmem:[%s700_s2 + $0x18] sm:$0xff]  ;;  %v31_v5 = vld [vmem:[%s701_s1] sm:$0xff]  ;;  %v158_v8 = vld [vmem:[%s702_s4 + $0x8] sm:$0xff] }
   0x3   :  { %v511_v6 = vpack.c.bf16 %v38_v4, %v37_v2  ;;  %457 = vmatprep.mubr.msk.f32.mxu0 %vm46_vm0, %v31_v5  ;;  %v157_v7 = vld [vmem:[%s702_s4] sm:$0xff]  ;;  %v159_v9 = vld [vmem:[%s702_s4 + $0x10] sm:$0xff]  ;;  %v160_v10 = vld [vmem:[%s702_s4 + $0x18] sm:$0xff] }
   0x4   :  { %508 = vmatprep.subr.bf16.mxu0 %v507_v3  ;;  %v515_v11 = vpack.c.bf16 %v158_v8, %v157_v7  ;;  %v519_v12 = vpack.c.bf16 %v160_v10, %v159_v9  ;;  %v32_v13 = vld [vmem:[%s701_s1 + $0x8] sm:$0xff]  ;;  %v33_v14 = vld [vmem:[%s701_s1 + $0x10] sm:$0xff]  ;;  %v34_v15 = vld [vmem:[%s701_s1 + $0x18] sm:$0xff] }
   0x5   :  { %510 = vmatpush3.bf16.msra.mxu0 %v507_v3  ;;  %v161_v16 = vld [vmem:[%s702_s4 + $0x20] sm:$0xff]  ;;  %v162_v17 = vld [vmem:[%s702_s4 + $0x28] sm:$0xff]  ;;  %v163_v19 = vld [vmem:[%s702_s4 + $0x30] sm:$0xff] }
   0x6   :  { %512 = vmatprep.subr.bf16.mxu0 %v511_v6  ;;  %516 = vmatprep.subr.bf16.mxu1 %v515_v11  ;;  %v523_v18 = vpack.c.bf16 %v162_v17, %v161_v16  ;;  %v164_v20 = vld [vmem:[%s702_s4 + $0x38] sm:$0xff]  ;;  %v282_v22 = vld [vmem:[%s703_s6] sm:$0xff]  ;;  %v283_v23 = vld [vmem:[%s703_s6 + $0x8] sm:$0xff] }
   0x7   :  { %518 = vmatpush3.bf16.msra.mxu1 %v515_v11  ;;  %v527_v21 = vpack.c.bf16 %v164_v20, %v163_v19  ;;  %v284_v24 = vld [vmem:[%s703_s6 + $0x10] sm:$0xff]  ;;  %v531_v25 = vpack.c.bf16 %v283_v23, %v282_v22  ;;  %v285_v26 = vld [vmem:[%s703_s6 + $0x18] sm:$0xff]  ;;  %v402_v28 = vld [vmem:[%s704_s3] ss:$0 sm:$0xff] }
   0x8   :  { %520 = vmatprep.subr.bf16.mxu1 %v519_v12  ;;  %v535_v27 = vpack.c.bf16 %v285_v26, %v284_v24  ;;  %v286_v46 = vld [vmem:[%s703_s6 + $0x20] sm:$0xff]  ;;  %v287_v47 = vld [vmem:[%s703_s6 + $0x28] sm:$0xff]  ;;  %v288_v49 = vld [vmem:[%s703_s6 + $0x30] sm:$0xff] }
   0x9   :  { %514 = vmatpush3.bf16.msra.mxu0 %v511_v6  ;;  %v539_v48 = vpack.c.bf16 %v287_v47, %v286_v46  ;;  %v289_v50 = vld [vmem:[%s703_s6 + $0x38] sm:$0xff]  ;;  %v407_v52 = vld [vmem:[%s706_s5] ss:$0 sm:$0xff] }
   0xa   :  { %532 = vmatprep.subr.bf16.mxu0 %v531_v25  ;;  %v543_v51 = vpack.c.bf16 %v289_v50, %v288_v49  ;;  %v412_v5 = vld [vmem:[%s707_s7] ss:$0 sm:$0xff] }
   0xb   :  { %522 = vmatpush3.bf16.msra.mxu1 %v519_v12 }
   0xc   :  { %458 = vmatmul.mubr.msk.f32.vlgmr.msra.gmra.mrb[0].mxu0 %vm46_vm0, %v32_v13  ;;  %524 = vmatprep.subr.bf16.mxu1 %v523_v18 }
   0xd   :  { %460 = vmatprep.mubr.msk.f32.mxu0 %vm46_vm0, %v33_v14  ;;  %534 = vmatpush3.bf16.msra.mxu0 %v531_v25 }
   0xe   :  { %536 = vmatprep.subr.bf16.mxu0 %v535_v27 }
   0xf   :  { %526 = vmatpush3.bf16.msra.mxu1 %v523_v18 }
  0x10   :  { %461 = vmatmul.mubr.msk.f32.gmra.mrb[2].mxu0 %vm46_vm0, %v34_v15  ;;  %528 = vmatprep.subr.bf16.mxu1 %v527_v21 }
  0x11   :  { %538 = vmatpush3.bf16.msra.mxu0 %v535_v27 }
  0x12   :  { %540 = vmatprep.subr.bf16.mxu0 %v539_v48 }
  0x13   :  { %530 = vmatpush3.bf16.msra.mxu1 %v527_v21 }
  0x15   :  { %542 = vmatpush3.bf16.msra.mxu0 %v539_v48 }
  0x16   :  { %544 = vmatprep.subr.bf16.mxu0 %v543_v51 }
  0x19   :  { %546 = vmatpush3.bf16.msra.mxu0 %v543_v51 }
  0xdf   :  { %v459_v29 = vpop.f32.mrb[0].mxu0 }
  0xe0   :  { %v131_v31 = vadd.f32 %v459_v29, %v402_v28  ;;  %v125_v32 = vpop.f32.mrb[1].mxu0 }
  0xe1   :  { %v126_v33 = vadd.f32 %v402_v28, %v125_v32 }
  0xe2   :  { %v150_v34 = vmul.f32 %v148_v30, %v131_v31  ;;  %vm145_vm1 = vcmp.ge.f32.partialorder %v131_v31, 0.0 }
  0xe3   :  { %v462_v35 = vpop.f32.mrb[2].mxu0  ;;  %vm144_vm2 = vcmp.ge.f32.partialorder %v126_v33, 0.0  ;;  %v149_v36 = vmul.f32 %v148_v30, %v126_v33 }
  0xe4   :  { %v141_v37 = vadd.f32 %v462_v35, %v402_v28  ;;  %v135_v38 = vpop.f32.mrb[3].mxu0  ;;  %v154_v42 = vsel %vm145_vm1, %v131_v31, %v150_v34 }
  0xe5   :  { %v136_v39 = vadd.f32 %v402_v28, %v135_v38  ;;  %v153_v40 = vsel %vm144_vm2, %v126_v33, %v149_v36 }
  0xe6   :  { %v152_v41 = vmul.f32 %v148_v30, %v141_v37  ;;  %479 = vmatprep.mubr.msk.f32.mxu1 %vm172_vm3, %v153_v40  ;;  %vm147_vm4 = vcmp.ge.f32.partialorder %v141_v37, 0.0 }
  0xe7   :  { %vm146_vm5 = vcmp.ge.f32.partialorder %v136_v39, 0.0  ;;  %v151_v43 = vmul.f32 %v148_v30, %v136_v39  ;;  %480 = vmatmul.mubr.msk.f32.vlgmr.msra.gmra.mrb[0].mxu1 %vm172_vm3, %v154_v42 }
  0xe8   :  { %v156_v45 = vsel %vm147_vm4, %v141_v37, %v152_v41 }
  0xe9   :  { %v155_v44 = vsel %vm146_vm5, %v136_v39, %v151_v43 }
  0xea   :  { %482 = vmatprep.mubr.msk.f32.mxu1 %vm172_vm3, %v155_v44 }
  0xeb   :  { %483 = vmatmul.mubr.msk.f32.gmra.mrb[2].mxu1 %vm172_vm3, %v156_v45 }
 0x1ba   :  { %v481_v53 = vpop.f32.mrb[0].mxu1 }
 0x1bb   :  { %v257_v54 = vadd.f32 %v481_v53, %v407_v52  ;;  %v251_v55 = vpop.f32.mrb[1].mxu1 }
 0x1bc   :  { %v252_v56 = vadd.f32 %v407_v52, %v251_v55 }
 0x1bd   :  { %v275_v57 = vmul.f32 %v257_v54, %v148_v30  ;;  %vm271_vm6 = vcmp.ge.f32.partialorder %v257_v54, 0.0 }
 0x1be   :  { %vm270_vm7 = vcmp.ge.f32.partialorder %v252_v56, 0.0  ;;  %v274_v58 = vmul.f32 %v252_v56, %v148_v30  ;;  %v484_v59 = vpop.f32.mrb[2].mxu1 }
 0x1bf   :  { %v267_v60 = vadd.f32 %v484_v59, %v407_v52  ;;  %v261_v61 = vpop.f32.mrb[3].mxu1  ;;  %v279_v0 = vsel %vm271_vm6, %v257_v54, %v275_v57 }
 0x1c0   :  { %v262_v62 = vadd.f32 %v407_v52, %v261_v61  ;;  %v278_v63 = vsel %vm270_vm7, %v252_v56, %v274_v58 }
 0x1c1   :  { %v277_v1 = vmul.f32 %v267_v60, %v148_v30  ;;  %501 = vmatprep.mubr.msk.f32.mxu0 %vm172_vm3, %v278_v63  ;;  %vm273_vm8 = vcmp.ge.f32.partialorder %v267_v60, 0.0 }
 0x1c2   :  { %vm272_vm9 = vcmp.ge.f32.partialorder %v262_v62, 0.0  ;;  %v276_v2 = vmul.f32 %v262_v62, %v148_v30  ;;  %502 = vmatmul.mubr.msk.f32.vlgmr.msra.gmra.mrb[4].mxu0 %vm172_vm3, %v279_v0 }
 0x1c3   :  { %v281_v4 = vsel %vm273_vm8, %v267_v60, %v277_v1 }
 0x1c4   :  { %v280_v3 = vsel %vm272_vm9, %v262_v62, %v276_v2 }
 0x1c5   :  { %504 = vmatprep.mubr.msk.f32.mxu0 %vm172_vm3, %v280_v3 }
 0x1c6   :  { %505 = vmatmul.mubr.msk.f32.gmra.mrb[6].mxu0 %vm172_vm3, %v281_v4 }
 0x295   :  { %v503_v6 = vpop.f32.mrb[4].mxu0 }
 0x296   :  { %v381_v7 = vadd.f32 %v503_v6, %v412_v5  ;;  %v375_v8 = vpop.f32.mrb[5].mxu0 }
 0x297   :  { %v376_v9 = vadd.f32 %v412_v5, %v375_v8 }
 0x298   :  { %395 = vst [vmem:[%s708_s8 + $0x8] sm:$0xff] %v381_v7 }
 0x299   :  { %394 = vst [vmem:[%s708_s8] sm:$0xff] %v376_v9  ;;  %v506_v10 = vpop.f32.mrb[6].mxu0 }
 0x29a   :  { %v391_v11 = vadd.f32 %v506_v10, %v412_v5  ;;  %v385_v12 = vpop.f32.mrb[7].mxu0 }
 0x29b   :  { %v386_v13 = vadd.f32 %v412_v5, %v385_v12 }
 0x29c   :  { %397 = vst [vmem:[%s708_s8 + $0x18] sm:$0xff] %v391_v11 }
 0x29d   :  { %396 = vst [vmem:[%s708_s8 + $0x10] sm:$0xff] %v386_v13 }

// kernel: lstm_obs_forward.2
= control target key start
LH: loop header
LB: loop body
LE: loop exit
PB: predicated region body
PF: predicated region fallthrough
CT: control target
= control target key end

     0   :  { %10 = vsyncpa [#allocation7], 0  ;;  %s3174_s0 = inlined_call_operand.hbm [shape: f32[8,4,16], index: 0, kind: input, shape index: {}]   ;;  %s3175_s1 = inlined_call_operand.hbm [shape: f32[48,128], index: 1, kind: input, shape index: {}]   ;;  %s3176_s2 = inlined_call_operand.vmem [shape: f32[1,128], index: 2, kind: input, shape index: {}]   ;;  %s3177_s3 = inlined_call_operand.hbm [shape: f32[64,128], index: 3, kind: input, shape index: {}]   ;;  %s3178_s4 = inlined_call_operand.vmem [shape: f32[1,128], index: 4, kind: input, shape index: {}]   ;;  %s3179_s5 = inlined_call_operand.vmem [shape: f32[8,4,32], index: 5, kind: output, shape index: {}]  }
   0x1   :  { %11 = vsyncpa [#allocation9], 0  ;;  %s2667_s18 = smov [#allocation8]   ;;  %s2597_s22 = scalar_lea.hbm %s3175_s1, 768 }
   0x2   :  { %s29_s19 = sshll.u32 %s2667_s18, 4  ;;  %p2598_p0 = scmp.ne.s32.totalorder %s3175_s1, %s2597_s22  ;;  %s30_s19 = int_to_ptr.vmem [resolvable:$true] %s29_s19 }
   0x3   :  { %p2601_p1 = scmp.lt.u32.totalorder %s2597_s22, %s3175_s1 }
   0x5   :  { %p2603_p2 = pnand %p2601_p1, %p2598_p0 }
   0x7   :  { %2606 = shalt.err (!%p2603_p2)
}
   0x8   :  { %s2607_s27 = scalar_lea.vmem %s30_s19, 768  ;;  %p2612_p4 = scmp.lt.s32.totalorder %s30_s19, %s30_s19 }
   0x9   :  { %p2608_p3 = scmp.ne.s32.totalorder %s30_s19, %s2607_s27  ;;  %p2613_p5 = scmp.lt.s32.totalorder %s2607_s27, %s2607_s27 }
   0xb   :  { %p2614_p6 = por %p2613_p5, %p2612_p4 }
   0xd   :  { %p2615_p7 = pnand %p2614_p6, %p2608_p3 }
   0xf   :  { %2618 = shalt.err (!%p2615_p7)
}
  0x10   :  { %s2668_s28 = smov 128   ;;  %s2669_s29 = smov 8  }
  0x11   :  { %35 = dma.hbm_to_vmem [thread:$0]  %s3175_s1, 768, %s30_s19, [#allocation9], %s2668_s28, %s2668_s28, %s2669_s29  }
  0x12   :  { %s2670_s7 = smov [#allocation6]   ;;  %s2619_s11 = scalar_lea.hbm %s3174_s0, 512 }
  0x13   :  { %s17_s8 = sshll.u32 %s2670_s7, 4  ;;  %p2620_p8 = scmp.ne.s32.totalorder %s3174_s0, %s2619_s11  ;;  %s18_s8 = int_to_ptr.vmem [resolvable:$true] %s17_s8 }
  0x14   :  { %p2623_p9 = scmp.lt.u32.totalorder %s2619_s11, %s3174_s0 }
  0x16   :  { %p2625_p10 = pnand %p2623_p9, %p2620_p8 }
  0x18   :  { %2628 = shalt.err (!%p2625_p10)
}
  0x19   :  { %s2629_s16 = scalar_lea.vmem %s18_s8, 512  ;;  %p2634_p12 = scmp.lt.s32.totalorder %s18_s8, %s18_s8 }
  0x1a   :  { %p2630_p11 = scmp.ne.s32.totalorder %s18_s8, %s2629_s16  ;;  %p2635_p13 = scmp.lt.s32.totalorder %s2629_s16, %s2629_s16 }
  0x1c   :  { %p2636_p0 = por %p2635_p13, %p2634_p12 }
  0x1e   :  { %p2637_p1 = pnand %p2636_p0, %p2630_p11 }
  0x20   :  { %2640 = shalt.err (!%p2637_p1)
}
  0x21   :  { %s2671_s1 = smov 64   ;;  %s2672_s17 = smov 4  }
  0x22   :  { %23 = dma.hbm_to_vmem [thread:$0]  %s3174_s0, 512, %s18_s8, [#allocation7], %s2671_s1, %s2671_s1, %s2672_s17  }
  0x23   :  { %s2673_s20 = smov [#allocation10]   ;;  %s2641_s24 = scalar_lea.hbm %s3177_s3, 1024 }
  0x24   :  { %s43_s21 = sshll.u32 %s2673_s20, 4  ;;  %p2642_p2 = scmp.ne.s32.totalorder %s3177_s3, %s2641_s24  ;;  %s44_s21 = int_to_ptr.vmem [resolvable:$true] %s43_s21 }
  0x25   :  { %p2645_p3 = scmp.lt.u32.totalorder %s2641_s24, %s3177_s3 }
  0x27   :  { %p2647_p4 = pnand %p2645_p3, %p2642_p2 }
  0x29   :  { %2650 = shalt.err (!%p2647_p4)
}
  0x2a   :  { %s2651_s6 = scalar_lea.vmem %s44_s21, 1024  ;;  %p2656_p6 = scmp.lt.s32.totalorder %s44_s21, %s44_s21 }
  0x2b   :  { %p2652_p5 = scmp.ne.s32.totalorder %s44_s21, %s2651_s6  ;;  %p2657_p7 = scmp.lt.s32.totalorder %s2651_s6, %s2651_s6 }
  0x2d   :  { %p2658_p8 = por %p2657_p7, %p2656_p6 }
  0x2f   :  { %p2659_p9 = pnand %p2658_p8, %p2652_p5 }
  0x31   :  { %2662 = shalt.err (!%p2659_p9)
}
  0x32   :  { %49 = dma.hbm_to_vmem [thread:$0]  %s3177_s3, 1024, %s44_s21, [#allocation9], %s2668_s28, %s2668_s28, %s2669_s29  }
  0x33   :  { %2663 = dma.done.wait [#allocation7], 512  }
  0x34   :  { %2664 = vsyncadd [#allocation7], 4294966784 }
  0x35   :  { %2665 = dma.done.wait [#allocation9], 1792  }
  0x36   :  { %2666 = vsyncadd [#allocation9], 4294965504  ;;  %vm65_vm0 = vcmask 257024   ;;  %v2674_v0 = vmov 0.0   ;;  %v2675_v1 = vmov 0.0|0.0   ;;  %vm2676_vm1 = vmmov 0  }
  0x37   :  { %66 = vst.msk [vmem:[#allocation2] sm:$0xf] %vm65_vm0, %v2674_v0  ;;  %67 = vst.msk [vmem:[#allocation3] sm:$0xf] %vm65_vm0, %v2674_v0  ;;  %2286 = vmatprep.subr.bf16.mxu1 %v2675_v1  ;;  %2307 = vmatprep.subr.bf16.mxu0 %v2675_v1  ;;  %v70_v2 = vld [vmem:[#allocation8] sm:$0xff]  ;;  %v71_v3 = vld [vmem:[#allocation8 + $0x8] sm:$0xff] }
  0x38   :  { %68 = vst.msk [vmem:[#allocation4] sm:$0xf] %vm65_vm0, %v2674_v0  ;;  %69 = vst.msk [vmem:[#allocation5] sm:$0xf] %vm65_vm0, %v2674_v0  ;;  %2026 = vmatprep.mubr.msk.f32.mxu1 %vm2676_vm1, %v2674_v0  ;;  %2060 = vmatprep.mubr.msk.f32.mxu0 %vm2676_vm1, %v2674_v0  ;;  %v72_v4 = vld [vmem:[#allocation8 + $0x10] sm:$0xff]  ;;  %v2769_v6 = vpack.c.bf16 %v71_v3, %v70_v2  ;;  %v73_v7 = vld [vmem:[#allocation8 + $0x18] sm:$0xff] }
  0x39   :  { %s2677_s3 = smov 16   ;;  %v2772_v9 = vpack.c.bf16 %v73_v7, %v72_v4  ;;  %s2678_s28 = smov 32   ;;  %v74_v10 = vld [vmem:[#allocation8 + $0x20] sm:$0xff]  ;;  %v75_v11 = vld [vmem:[#allocation8 + $0x28] sm:$0xff]  ;;  %vm107_vm2 = vcmask 130048   ;;  %vm109_vm3 = vcmask 392192  }
  0x3a   :  { %2288 = vmatpush3.bf16.msra.mxu1 %v2769_v6  ;;  %2309 = vmatpush3.bf16.msra.mxu0 %v2769_v6  ;;  %v2779_v12 = vpack.c.bf16 %v75_v11, %v74_v10  ;;  %v102_v13 = vld [vmem:[#allocation6] sm:$0xf]  ;;  %v2795_v16 = vld [vmem:[%s3176_s2] ss:$0 sm:$0xff]  ;;  %v77_v32 = vld [vmem:[#allocation10 + $0x8] sm:$0xff]  ;;  %s2679_s9 = smov 48  }
  0x3b   :  { %2289 = vmatprep.subr.bf16.mxu1 %v2675_v1  ;;  %2310 = vmatprep.subr.bf16.mxu0 %v2675_v1  ;;  %v76_v31 = vld [vmem:[#allocation10] sm:$0xff]  ;;  %v78_v33 = vld [vmem:[#allocation10 + $0x10] sm:$0xff]  ;;  %v79_v35 = vld [vmem:[#allocation10 + $0x18] sm:$0xff]  ;;  %vm219_vm4 = vcmask 261120   ;;  %vm221_vm5 = vcmask 523264  }
  0x3c   :  { %v2803_v34 = vpack.c.bf16 %v77_v32, %v76_v31  ;;  %v2806_v36 = vpack.c.bf16 %v79_v35, %v78_v33  ;;  %v80_v37 = vld [vmem:[#allocation10 + $0x20] sm:$0xff]  ;;  %v81_v38 = vld [vmem:[#allocation10 + $0x28] sm:$0xff]  ;;  %v82_v42 = vld [vmem:[#allocation10 + $0x30] sm:$0xff] }
  0x3d   :  { %v2811_v40 = vpack.c.bf16 %v81_v38, %v80_v37  ;;  %v83_v43 = vld [vmem:[#allocation10 + $0x38] sm:$0xff]  ;;  %v330_v50 = vld [vmem:[#allocation6 + $0x4] sm:$0xf]  ;;  %v2848_v53 = vld [vmem:[%s3178_s4] ss:$0 sm:$0xff] }
  0x3e   :  { %v98_v5 = vld [vmem:[#allocation2] sm:$0xf]  ;;  %v99_v8 = vld [vmem:[#allocation3] sm:$0xf]  ;;  %2291 = vmatpush3.bf16.msra.mxu1 %v2772_v9  ;;  %2312 = vmatpush3.bf16.msra.mxu0 %v2772_v9  ;;  %v2816_v44 = vpack.c.bf16 %v83_v43, %v82_v42  ;;  %v544_v33 = vld [vmem:[#allocation6 + $0x8] sm:$0xf] }
  0x3f   :  { %104 = vrot.lane.b32.xlu0 %v98_v5, %s2677_s3  ;;  %191 = vrot.lane.b32.xlu1 %v99_v8, %s2678_s28  ;;  %v100_v41 = vld [vmem:[#allocation4] sm:$0xf]  ;;  %v101_v61 = vld [vmem:[#allocation5] sm:$0xf] }
  0x40   :  { %2292 = vmatprep.subr.bf16.mxu1 %v2675_v1  ;;  %2313 = vmatprep.subr.bf16.mxu0 %v2675_v1 }
  0x42   :  { %2294 = vmatpush3.bf16.msra.mxu1 %v2779_v12  ;;  %2315 = vmatpush3.bf16.msra.mxu0 %v2779_v12 }
  0x43   :  { %2295 = vmatprep.subr.bf16.mxu1 %v2675_v1  ;;  %2328 = vmatprep.subr.bf16.mxu0 %v2675_v1 }
  0xb1   :  { %v105_v14 = vpop.permute.xlu0 %104  ;;  %v192_v27 = vpop.permute.xlu1 %191 }
  0xb2   :  { %v108_v15 = vsel %vm107_vm2, %v102_v13, %v105_v14 }
  0xb3   :  { %2027 = vmatmul.mubr.msk.f32.vlgmr.msra.gmra.mrb[0].mxu1 %vm109_vm3, %v108_v15 }
  0xb4   :  { %2045 = vmatprep.mubr.msk.f32.mxu1 %vm2676_vm1, %v2674_v0  ;;  %2297 = vmatpush3.bf16.msra.mxu1 %v2803_v34 }
  0xb5   :  { %2298 = vmatprep.subr.bf16.mxu1 %v2675_v1 }
  0xb8   :  { %2300 = vmatpush3.bf16.msra.mxu1 %v2806_v36 }
  0xb9   :  { %2301 = vmatprep.subr.bf16.mxu1 %v2675_v1 }
  0xbc   :  { %2303 = vmatpush3.bf16.msra.mxu1 %v2811_v40 }
  0xbd   :  { %2304 = vmatprep.subr.bf16.mxu1 %v2675_v1 }
  0xc0   :  { %2306 = vmatpush3.bf16.msra.mxu1 %v2816_v44 }
  0xc1   :  { %2316 = vmatprep.subr.bf16.mxu1 %v2675_v1 }
 0x186   :  { %v179_v17 = vpop.f32.mrb[0].mxu1 }
 0x187   :  { %v180_v18 = vadd.f32 %v2795_v16, %v179_v17  ;;  %v2028_v19 = vpop.f32.mrb[1].mxu1 }
 0x189   :  { %2468 = vtanh.f32 %v180_v18  ;;  %v1848_v21 = vmul.f32 -1.442695, %v180_v18 }
 0x18b   :  { %2470 = vpow2.f32 %v1848_v21 }
 0x193   :  { %v2469_v20 = vpop.eup %2468 }
 0x194   :  { %196 = vrot.lane.b32.xlu0 %v2469_v20, %s2671_s1 }
 0x195   :  { %v2471_v22 = vpop.eup %2470 }
 0x196   :  { %v186_v23 = vadd.f32 1.0, %v2471_v22 }
 0x198   :  { %2472 = vrcp.f32 %v186_v23 }
 0x1a2   :  { %v2473_v24 = vpop.eup %2472 }
 0x1a3   :  { %v194_v28 = vmul.f32 %v2473_v24, %v192_v27 }
 0x206   :  { %v197_v25 = vpop.permute.xlu0 %196 }
 0x207   :  { %v199_v26 = vmul.f32 %v2473_v24, %v197_v25 }
 0x209   :  { %201 = vrot.lane.b32.xlu1 %v199_v26, %s2678_s28 }
 0x27b   :  { %v202_v29 = vpop.permute.xlu1 %201 }
 0x27c   :  { %v2800_v30 = vadd.f32 %v202_v29, %v194_v28 }
 0x27e   :  { %2474 = vtanh.f32 %v2800_v30 }
 0x288   :  { %v2475_v39 = vpop.eup %2474 }
 0x289   :  { %207 = vrot.lane.b32.xlu0 %v2475_v39, %s2671_s1 }
 0x28d   :  { %216 = vrot.lane.b32.xlu0 %v100_v41, %s2678_s28 }
 0x2fb   :  { %v208_v45 = vpop.permute.xlu0 %207 }
 0x2fc   :  { %v210_v46 = vmul.f32 %v2473_v24, %v208_v45 }
 0x2fe   :  { %212 = vrot.lane.b32.xlu1 %v210_v46, %s2678_s28 }
 0x2ff   :  { %v217_v47 = vpop.permute.xlu0 %216 }
 0x302   :  { %331 = vrot.lane.b32.xlu1 %v210_v46, %s2679_s9 }
 0x370   :  { %v213_v48 = vpop.permute.xlu1 %212 }
 0x371   :  { %v220_v49 = vsel %vm219_vm4, %v213_v48, %v217_v47 }
 0x372   :  { %2046 = vmatmul.mubr.msk.f32.vlgmr.msra.gmra.mrb[2].mxu1 %vm221_vm5, %v220_v49 }
 0x373   :  { %2318 = vmatpush3.bf16.msra.mxu1 %v2803_v34  ;;  %2079 = vmatprep.mubr.msk.f32.mxu1 %vm2676_vm1, %v2674_v0 }
 0x374   :  { %v332_v51 = vpop.permute.xlu1 %331  ;;  %2319 = vmatprep.subr.bf16.mxu1 %v2675_v1 }
 0x375   :  { %v334_v52 = vsel %vm107_vm2, %v330_v50, %v332_v51 }
 0x376   :  { %2061 = vmatmul.mubr.msk.f32.vlgmr.msra.gmra.mrb[0].mxu0 %vm109_vm3, %v334_v52 }
 0x377   :  { %2321 = vmatpush3.bf16.msra.mxu1 %v2806_v36  ;;  %2330 = vmatpush3.bf16.msra.mxu0 %v2769_v6 }
 0x378   :  { %2322 = vmatprep.subr.bf16.mxu1 %v2675_v1  ;;  %2331 = vmatprep.subr.bf16.mxu0 %v2675_v1 }
 0x379   :  { %2094 = vmatprep.mubr.msk.f32.mxu0 %vm2676_vm1, %v2674_v0 }
 0x37b   :  { %2324 = vmatpush3.bf16.msra.mxu1 %v2811_v40  ;;  %2333 = vmatpush3.bf16.msra.mxu0 %v2772_v9 }
 0x37c   :  { %2325 = vmatprep.subr.bf16.mxu1 %v2675_v1  ;;  %2334 = vmatprep.subr.bf16.mxu0 %v2675_v1 }
 0x37f   :  { %2327 = vmatpush3.bf16.msra.mxu1 %v2816_v44  ;;  %2336 = vmatpush3.bf16.msra.mxu0 %v2779_v12 }
 0x380   :  { %2337 = vmatprep.subr.bf16.mxu1 %v2675_v1  ;;  %2349 = vmatprep.subr.bf16.mxu0 %v2675_v1 }
 0x445   :  { %v291_v54 = vpop.f32.mrb[2].mxu1 }
 0x446   :  { %v292_v55 = vadd.f32 %v2848_v53, %v291_v54  ;;  %v2047_v56 = vpop.f32.mrb[3].mxu1 }
 0x448   :  { %2476 = vtanh.f32 %v292_v55  ;;  %v1850_v63 = vmul.f32 -1.442695, %v292_v55 }
 0x449   :  { %v404_v57 = vpop.f32.mrb[0].mxu0 }
 0x44a   :  { %v405_v58 = vadd.f32 %v2795_v16, %v404_v57  ;;  %v2062_v59 = vpop.f32.mrb[1].mxu0 }
 0x44c   :  { %2478 = vtanh.f32 %v405_v58  ;;  %v1852_v2 = vmul.f32 -1.442695, %v405_v58 }
 0x44d   :  { %2480 = vpow2.f32 %v1850_v63 }
 0x44e   :  { %2482 = vpow2.f32 %v1852_v2 }
 0x452   :  { %v2477_v60 = vpop.eup %2476 }
 0x453   :  { %308 = vrot.lane.b32.xlu0 %v2477_v60, %s2671_s1 }
 0x456   :  { %v2479_v62 = vpop.eup %2478 }
 0x457   :  { %417 = vrot.lane.b32.xlu1 %v2479_v62, %s2671_s1  ;;  %303 = vrot.lane.b32.xlu0 %v101_v61, %s2678_s28  ;;  %v2481_v3 = vpop.eup %2480 }
 0x458   :  { %v298_v4 = vadd.f32 1.0, %v2481_v3  ;;  %v2483_v5 = vpop.eup %2482 }
 0x459   :  { %v411_v7 = vadd.f32 1.0, %v2483_v5 }
 0x45a   :  { %2484 = vrcp.f32 %v298_v4 }
 0x45b   :  { %2486 = vrcp.f32 %v411_v7 }
 0x464   :  { %v2485_v8 = vpop.eup %2484 }
 0x465   :  { %v2487_v13 = vpop.eup %2486 }
 0x466   :  { %v415_v21 = vmul.f32 %v2487_v13, %v2800_v30 }
 0x4c5   :  { %v309_v10 = vpop.permute.xlu0 %308 }
 0x4c6   :  { %v311_v11 = vmul.f32 %v2485_v8, %v309_v10 }
 0x4c8   :  { %313 = vrot.lane.b32.xlu1 %v311_v11, %s2678_s28 }
 0x4c9   :  { %v418_v14 = vpop.permute.xlu1 %417  ;;  %v304_v17 = vpop.permute.xlu0 %303 }
 0x4ca   :  { %v420_v15 = vmul.f32 %v2487_v13, %v418_v14  ;;  %v306_v18 = vmul.f32 %v2485_v8, %v304_v17 }
 0x4cc   :  { %422 = vrot.lane.b32.xlu0 %v420_v15, %s2678_s28 }
 0x53a   :  { %v314_v19 = vpop.permute.xlu1 %313 }
 0x53b   :  { %v2857_v20 = vadd.f32 %v314_v19, %v306_v18  ;;  %v758_v18 = vld [vmem:[#allocation6 + $0xc] sm:$0xf] }
 0x53d   :  { %2488 = vtanh.f32 %v2857_v20 }
 0x53e   :  { %v423_v22 = vpop.permute.xlu0 %422 }
 0x53f   :  { %v2861_v23 = vadd.f32 %v423_v22, %v415_v21 }
 0x541   :  { %2490 = vtanh.f32 %v2861_v23 }
 0x547   :  { %v2489_v24 = vpop.eup %2488 }
 0x548   :  { %319 = vrot.lane.b32.xlu1 %v2489_v24, %s2671_s1 }
 0x54b   :  { %v2491_v25 = vpop.eup %2490 }
 0x54c   :  { %428 = vrot.lane.b32.xlu0 %v2491_v25, %s2671_s1 }
 0x5ba   :  { %v320_v26 = vpop.permute.xlu1 %319 }
 0x5bb   :  { %v2866_v27 = vmul.f32 %v2485_v8, %v320_v26 }
 0x5bd   :  { %436 = vrot.lane.b32.xlu0 %v2866_v27, %s2671_s1 }
 0x5be   :  { %v429_v28 = vpop.permute.xlu0 %428 }
 0x5bf   :  { %v431_v29 = vmul.f32 %v2487_v13, %v429_v28 }
 0x5c1   :  { %433 = vrot.lane.b32.xlu1 %v431_v29, %s2678_s28 }
 0x5c5   :  { %545 = vrot.lane.b32.xlu1 %v431_v29, %s2679_s9 }
 0x62f   :  { %v437_v30 = vpop.permute.xlu0 %436 }
 0x633   :  { %v434_v31 = vpop.permute.xlu1 %433 }
 0x634   :  { %v439_v32 = vsel %vm219_vm4, %v434_v31, %v437_v30 }
 0x635   :  { %2080 = vmatmul.mubr.msk.f32.vlgmr.msra.gmra.mrb[4].mxu1 %vm221_vm5, %v439_v32 }
 0x636   :  { %2339 = vmatpush3.bf16.msra.mxu1 %v2803_v34  ;;  %2113 = vmatprep.mubr.msk.f32.mxu1 %vm2676_vm1, %v2674_v0 }
 0x637   :  { %v546_v35 = vpop.permute.xlu1 %545  ;;  %2340 = vmatprep.subr.bf16.mxu1 %v2675_v1 }
 0x638   :  { %v548_v37 = vsel %vm107_vm2, %v544_v33, %v546_v35 }
 0x639   :  { %2095 = vmatmul.mubr.msk.f32.vlgmr.msra.gmra.mrb[2].mxu0 %vm109_vm3, %v548_v37 }
 0x63a   :  { %2342 = vmatpush3.bf16.msra.mxu1 %v2806_v36  ;;  %2351 = vmatpush3.bf16.msra.mxu0 %v2769_v6 }
 0x63b   :  { %2343 = vmatprep.subr.bf16.mxu1 %v2675_v1  ;;  %2352 = vmatprep.subr.bf16.mxu0 %v2675_v1 }
 0x63c   :  { %2128 = vmatprep.mubr.msk.f32.mxu0 %vm2676_vm1, %v2674_v0 }
 0x63e   :  { %2345 = vmatpush3.bf16.msra.mxu1 %v2811_v40  ;;  %2354 = vmatpush3.bf16.msra.mxu0 %v2772_v9 }
 0x63f   :  { %2346 = vmatprep.subr.bf16.mxu1 %v2675_v1  ;;  %2355 = vmatprep.subr.bf16.mxu0 %v2675_v1 }
 0x642   :  { %2348 = vmatpush3.bf16.msra.mxu1 %v2816_v44  ;;  %2357 = vmatpush3.bf16.msra.mxu0 %v2779_v12 }
 0x643   :  { %2358 = vmatprep.subr.bf16.mxu0 %v2675_v1  ;;  %2370 = vmatprep.subr.bf16.mxu1 %v2675_v1 }
 0x708   :  { %v509_v38 = vpop.f32.mrb[4].mxu1 }
 0x709   :  { %v510_v39 = vadd.f32 %v2848_v53, %v509_v38  ;;  %v2081_v41 = vpop.f32.mrb[5].mxu1 }
 0x70b   :  { %2492 = vtanh.f32 %v510_v39  ;;  %v1854_v48 = vmul.f32 -1.442695, %v510_v39 }
 0x70c   :  { %v618_v42 = vpop.f32.mrb[2].mxu0 }
 0x70d   :  { %v619_v43 = vadd.f32 %v2795_v16, %v618_v42  ;;  %v2096_v45 = vpop.f32.mrb[3].mxu0 }
 0x70f   :  { %2494 = vtanh.f32 %v619_v43  ;;  %v1857_v49 = vmul.f32 -1.442695, %v619_v43 }
 0x710   :  { %2496 = vpow2.f32 %v1854_v48 }
 0x711   :  { %2498 = vpow2.f32 %v1857_v49 }
 0x715   :  { %v2493_v46 = vpop.eup %2492 }
 0x716   :  { %522 = vrot.lane.b32.xlu0 %v2493_v46, %s2671_s1 }
 0x719   :  { %v2495_v47 = vpop.eup %2494 }
 0x71a   :  { %631 = vrot.lane.b32.xlu1 %v2495_v47, %s2671_s1  ;;  %v2497_v50 = vpop.eup %2496 }
 0x71b   :  { %v516_v51 = vadd.f32 1.0, %v2497_v50  ;;  %v2499_v52 = vpop.eup %2498 }
 0x71c   :  { %v625_v54 = vadd.f32 1.0, %v2499_v52 }
 0x71d   :  { %2500 = vrcp.f32 %v516_v51 }
 0x71e   :  { %2502 = vrcp.f32 %v625_v54 }
 0x727   :  { %v2501_v55 = vpop.eup %2500 }
 0x728   :  { %v2503_v58 = vpop.eup %2502  ;;  %v520_v61 = vmul.f32 %v2501_v55, %v2857_v20 }
 0x729   :  { %v629_v2 = vmul.f32 %v2503_v58, %v2861_v23 }
 0x788   :  { %v523_v56 = vpop.permute.xlu0 %522 }
 0x789   :  { %v525_v57 = vmul.f32 %v2501_v55, %v523_v56 }
 0x78b   :  { %527 = vrot.lane.b32.xlu0 %v525_v57, %s2678_s28 }
 0x78c   :  { %v632_v59 = vpop.permute.xlu1 %631 }
 0x78d   :  { %v634_v60 = vmul.f32 %v2503_v58, %v632_v59 }
 0x78f   :  { %636 = vrot.lane.b32.xlu1 %v634_v60, %s2678_s28 }
 0x7fd   :  { %v528_v62 = vpop.permute.xlu0 %527 }
 0x7fe   :  { %v2901_v63 = vadd.f32 %v528_v62, %v520_v61  ;;  %v972_v62 = vld [vmem:[#allocation6 + $0x10] sm:$0xf] }
 0x800   :  { %2504 = vtanh.f32 %v2901_v63 }
 0x801   :  { %v637_v3 = vpop.permute.xlu1 %636 }
 0x802   :  { %v2905_v4 = vadd.f32 %v637_v3, %v629_v2 }
 0x804   :  { %2506 = vtanh.f32 %v2905_v4 }
 0x80a   :  { %v2505_v5 = vpop.eup %2504 }
 0x80b   :  { %533 = vrot.lane.b32.xlu0 %v2505_v5, %s2671_s1 }
 0x80e   :  { %v2507_v7 = vpop.eup %2506 }
 0x80f   :  { %642 = vrot.lane.b32.xlu1 %v2507_v7, %s2671_s1 }
 0x87d   :  { %v534_v8 = vpop.permute.xlu0 %533 }
 0x87e   :  { %v2910_v10 = vmul.f32 %v2501_v55, %v534_v8 }
 0x880   :  { %650 = vrot.lane.b32.xlu1 %v2910_v10, %s2671_s1 }
 0x881   :  { %v643_v11 = vpop.permute.xlu1 %642 }
 0x882   :  { %v645_v13 = vmul.f32 %v2503_v58, %v643_v11 }
 0x884   :  { %647 = vrot.lane.b32.xlu0 %v645_v13, %s2678_s28 }
 0x888   :  { %759 = vrot.lane.b32.xlu0 %v645_v13, %s2679_s9 }
 0x8f2   :  { %v651_v14 = vpop.permute.xlu1 %650 }
 0x8f6   :  { %v648_v15 = vpop.permute.xlu0 %647 }
 0x8f7   :  { %v653_v17 = vsel %vm219_vm4, %v648_v15, %v651_v14 }
 0x8f8   :  { %2114 = vmatmul.mubr.msk.f32.vlgmr.msra.gmra.mrb[6].mxu1 %vm221_vm5, %v653_v17 }
 0x8f9   :  { %2372 = vmatpush3.bf16.msra.mxu1 %v2769_v6  ;;  %2162 = vmatprep.mubr.msk.f32.mxu1 %vm2676_vm1, %v2674_v0 }
 0x8fa   :  { %v760_v19 = vpop.permute.xlu0 %759  ;;  %2373 = vmatprep.subr.bf16.mxu1 %v2675_v1 }
 0x8fb   :  { %v762_v20 = vsel %vm107_vm2, %v758_v18, %v760_v19 }
 0x8fc   :  { %2129 = vmatmul.mubr.msk.f32.vlgmr.msra.gmra.mrb[4].mxu0 %vm109_vm3, %v762_v20 }
 0x8fd   :  { %2360 = vmatpush3.bf16.msra.mxu0 %v2803_v34  ;;  %2375 = vmatpush3.bf16.msra.mxu1 %v2772_v9 }
 0x8fe   :  { %2361 = vmatprep.subr.bf16.mxu0 %v2675_v1  ;;  %2147 = vmatprep.mubr.msk.f32.mxu0 %vm2676_vm1, %v2674_v0 }
 0x8ff   :  { %2376 = vmatprep.subr.bf16.mxu1 %v2675_v1 }
 0x901   :  { %2363 = vmatpush3.bf16.msra.mxu0 %v2806_v36  ;;  %2378 = vmatpush3.bf16.msra.mxu1 %v2779_v12 }
 0x902   :  { %2364 = vmatprep.subr.bf16.mxu0 %v2675_v1  ;;  %2379 = vmatprep.subr.bf16.mxu1 %v2675_v1 }
 0x905   :  { %2366 = vmatpush3.bf16.msra.mxu0 %v2811_v40 }
 0x906   :  { %2367 = vmatprep.subr.bf16.mxu0 %v2675_v1 }
 0x909   :  { %2369 = vmatpush3.bf16.msra.mxu0 %v2816_v44 }
 0x90a   :  { %2391 = vmatprep.subr.bf16.mxu0 %v2675_v1 }
 0x9cb   :  { %v723_v21 = vpop.f32.mrb[6].mxu1 }
 0x9cc   :  { %v724_v22 = vadd.f32 %v2848_v53, %v723_v21  ;;  %v2115_v23 = vpop.f32.mrb[7].mxu1 }
 0x9ce   :  { %2508 = vtanh.f32 %v724_v22  ;;  %v1859_v30 = vmul.f32 -1.442695, %v724_v22 }
 0x9cf   :  { %v832_v24 = vpop.f32.mrb[4].mxu0 }
 0x9d0   :  { %v833_v25 = vadd.f32 %v2795_v16, %v832_v24  ;;  %v2130_v26 = vpop.f32.mrb[5].mxu0 }
 0x9d2   :  { %2510 = vtanh.f32 %v833_v25  ;;  %v1862_v31 = vmul.f32 -1.442695, %v833_v25 }
 0x9d3   :  { %2512 = vpow2.f32 %v1859_v30 }
 0x9d4   :  { %2514 = vpow2.f32 %v1862_v31 }
 0x9d8   :  { %v2509_v28 = vpop.eup %2508 }
 0x9d9   :  { %736 = vrot.lane.b32.xlu1 %v2509_v28, %s2671_s1 }
 0x9dc   :  { %v2511_v29 = vpop.eup %2510 }
 0x9dd   :  { %845 = vrot.lane.b32.xlu0 %v2511_v29, %s2671_s1  ;;  %v2513_v32 = vpop.eup %2512 }
 0x9de   :  { %v730_v33 = vadd.f32 1.0, %v2513_v32  ;;  %v2515_v35 = vpop.eup %2514 }
 0x9df   :  { %v839_v37 = vadd.f32 1.0, %v2515_v35 }
 0x9e0   :  { %2516 = vrcp.f32 %v730_v33 }
 0x9e1   :  { %2518 = vrcp.f32 %v839_v37 }
 0x9ea   :  { %v2517_v38 = vpop.eup %2516 }
 0x9eb   :  { %v2519_v42 = vpop.eup %2518  ;;  %v734_v46 = vmul.f32 %v2517_v38, %v2901_v63 }
 0x9ec   :  { %v843_v49 = vmul.f32 %v2519_v42, %v2905_v4 }
 0xa4b   :  { %v737_v39 = vpop.permute.xlu1 %736 }
 0xa4c   :  { %v739_v41 = vmul.f32 %v2517_v38, %v737_v39 }
 0xa4e   :  { %741 = vrot.lane.b32.xlu1 %v739_v41, %s2678_s28 }
 0xa4f   :  { %v846_v43 = vpop.permute.xlu0 %845 }
 0xa50   :  { %v848_v45 = vmul.f32 %v2519_v42, %v846_v43 }
 0xa52   :  { %850 = vrot.lane.b32.xlu0 %v848_v45, %s2678_s28 }
 0xac0   :  { %v742_v47 = vpop.permute.xlu1 %741 }
 0xac1   :  { %v2945_v48 = vadd.f32 %v742_v47, %v734_v46 }
 0xac3   :  { %2520 = vtanh.f32 %v2945_v48 }
 0xac4   :  { %v851_v50 = vpop.permute.xlu0 %850 }
 0xac5   :  { %v2949_v51 = vadd.f32 %v851_v50, %v843_v49 }
 0xac7   :  { %2522 = vtanh.f32 %v2949_v51 }
 0xacd   :  { %v2521_v52 = vpop.eup %2520 }
 0xace   :  { %747 = vrot.lane.b32.xlu1 %v2521_v52, %s2671_s1 }
 0xad1   :  { %v2523_v54 = vpop.eup %2522 }
 0xad2   :  { %856 = vrot.lane.b32.xlu0 %v2523_v54, %s2671_s1 }
 0xb40   :  { %v748_v55 = vpop.permute.xlu1 %747 }
 0xb41   :  { %v2954_v56 = vmul.f32 %v2517_v38, %v748_v55 }
 0xb43   :  { %864 = vrot.lane.b32.xlu0 %v2954_v56, %s2671_s1 }
 0xb44   :  { %v857_v57 = vpop.permute.xlu0 %856 }
 0xb45   :  { %v859_v58 = vmul.f32 %v2519_v42, %v857_v57 }
 0xb47   :  { %861 = vrot.lane.b32.xlu1 %v859_v58, %s2678_s28 }
 0xb4b   :  { %973 = vrot.lane.b32.xlu1 %v859_v58, %s2679_s9 }
 0xbb5   :  { %v865_v59 = vpop.permute.xlu0 %864 }
 0xbb9   :  { %v862_v60 = vpop.permute.xlu1 %861 }
 0xbba   :  { %v867_v61 = vsel %vm219_vm4, %v862_v60, %v865_v59 }
 0xbbb   :  { %2148 = vmatmul.mubr.msk.f32.vlgmr.msra.gmra.mrb[6].mxu0 %vm221_vm5, %v867_v61 }
 0xbbc   :  { %2393 = vmatpush3.bf16.msra.mxu0 %v2769_v6  ;;  %2196 = vmatprep.mubr.msk.f32.mxu0 %vm2676_vm1, %v2674_v0 }
 0xbbd   :  { %v974_v63 = vpop.permute.xlu1 %973  ;;  %2394 = vmatprep.subr.bf16.mxu0 %v2675_v1 }
 0xbbe   :  { %v976_v2 = vsel %vm107_vm2, %v972_v62, %v974_v63 }
 0xbbf   :  { %2163 = vmatmul.mubr.msk.f32.vlgmr.msra.gmra.mrb[8].mxu1 %vm109_vm3, %v976_v2 }
 0xbc0   :  { %2381 = vmatpush3.bf16.msra.mxu1 %v2803_v34  ;;  %2396 = vmatpush3.bf16.msra.mxu0 %v2772_v9 }
 0xbc1   :  { %2382 = vmatprep.subr.bf16.mxu1 %v2675_v1  ;;  %2181 = vmatprep.mubr.msk.f32.mxu1 %vm2676_vm1, %v2674_v0 }
 0xbc2   :  { %2397 = vmatprep.subr.bf16.mxu0 %v2675_v1 }
 0xbc4   :  { %2384 = vmatpush3.bf16.msra.mxu1 %v2806_v36  ;;  %2399 = vmatpush3.bf16.msra.mxu0 %v2779_v12 }
 0xbc5   :  { %2385 = vmatprep.subr.bf16.mxu1 %v2675_v1  ;;  %2400 = vmatprep.subr.bf16.mxu0 %v2675_v1 }
 0xbc8   :  { %2387 = vmatpush3.bf16.msra.mxu1 %v2811_v40 }
 0xbc9   :  { %2388 = vmatprep.subr.bf16.mxu1 %v2675_v1 }
 0xbcc   :  { %2390 = vmatpush3.bf16.msra.mxu1 %v2816_v44 }
 0xbcd   :  { %2412 = vmatprep.subr.bf16.mxu1 %v2675_v1 }
 0xc8e   :  { %v937_v3 = vpop.f32.mrb[6].mxu0 }
 0xc8f   :  { %v938_v4 = vadd.f32 %v2848_v53, %v937_v3  ;;  %v2149_v5 = vpop.f32.mrb[7].mxu0 }
 0xc91   :  { %2524 = vtanh.f32 %v938_v4  ;;  %v1864_v15 = vmul.f32 -1.442695, %v938_v4 }
 0xc92   :  { %v1046_v7 = vpop.f32.mrb[8].mxu1 }
 0xc93   :  { %v1047_v8 = vadd.f32 %v2795_v16, %v1046_v7  ;;  %v2164_v11 = vpop.f32.mrb[9].mxu1 }
 0xc95   :  { %2526 = vtanh.f32 %v1047_v8  ;;  %v1867_v17 = vmul.f32 -1.442695, %v1047_v8 }
 0xc96   :  { %2528 = vpow2.f32 %v1864_v15 }
 0xc97   :  { %2530 = vpow2.f32 %v1867_v17 }
 0xc9b   :  { %v2525_v13 = vpop.eup %2524 }
 0xc9c   :  { %950 = vrot.lane.b32.xlu0 %v2525_v13, %s2671_s1 }
 0xc9f   :  { %v2527_v14 = vpop.eup %2526 }
 0xca0   :  { %1059 = vrot.lane.b32.xlu1 %v2527_v14, %s2671_s1  ;;  %v2529_v18 = vpop.eup %2528 }
 0xca1   :  { %v944_v19 = vadd.f32 1.0, %v2529_v18  ;;  %v2531_v20 = vpop.eup %2530 }
 0xca2   :  { %v1053_v21 = vadd.f32 1.0, %v2531_v20 }
 0xca3   :  { %2532 = vrcp.f32 %v944_v19 }
 0xca4   :  { %2534 = vrcp.f32 %v1053_v21 }
 0xcad   :  { %v2533_v22 = vpop.eup %2532 }
 0xcae   :  { %v2535_v25 = vpop.eup %2534  ;;  %v948_v29 = vmul.f32 %v2533_v22, %v2945_v48  ;;  %v1186_v48 = vld [vmem:[#allocation6 + $0x14] sm:$0xf] }
 0xcaf   :  { %v1057_v32 = vmul.f32 %v2535_v25, %v2949_v51 }
 0xd0e   :  { %v951_v23 = vpop.permute.xlu0 %950 }
 0xd0f   :  { %v953_v24 = vmul.f32 %v2533_v22, %v951_v23 }
 0xd11   :  { %955 = vrot.lane.b32.xlu0 %v953_v24, %s2678_s28 }
 0xd12   :  { %v1060_v26 = vpop.permute.xlu1 %1059 }
 0xd13   :  { %v1062_v28 = vmul.f32 %v2535_v25, %v1060_v26 }
 0xd15   :  { %1064 = vrot.lane.b32.xlu1 %v1062_v28, %s2678_s28 }
 0xd83   :  { %v956_v30 = vpop.permute.xlu0 %955 }
 0xd84   :  { %v2989_v31 = vadd.f32 %v956_v30, %v948_v29 }
 0xd86   :  { %2536 = vtanh.f32 %v2989_v31 }
 0xd87   :  { %v1065_v33 = vpop.permute.xlu1 %1064 }
 0xd88   :  { %v2993_v35 = vadd.f32 %v1065_v33, %v1057_v32  ;;  %v1400_v32 = vld [vmem:[#allocation6 + $0x18] sm:$0xf] }
 0xd8a   :  { %2538 = vtanh.f32 %v2993_v35 }
 0xd90   :  { %v2537_v37 = vpop.eup %2536 }
 0xd91   :  { %961 = vrot.lane.b32.xlu0 %v2537_v37, %s2671_s1 }
 0xd94   :  { %v2539_v38 = vpop.eup %2538 }
 0xd95   :  { %1070 = vrot.lane.b32.xlu1 %v2539_v38, %s2671_s1 }
 0xe03   :  { %v962_v39 = vpop.permute.xlu0 %961 }
 0xe04   :  { %v2998_v41 = vmul.f32 %v2533_v22, %v962_v39 }
 0xe06   :  { %1078 = vrot.lane.b32.xlu1 %v2998_v41, %s2671_s1 }
 0xe07   :  { %v1071_v42 = vpop.permute.xlu1 %1070 }
 0xe08   :  { %v1073_v43 = vmul.f32 %v2535_v25, %v1071_v42 }
 0xe0a   :  { %1075 = vrot.lane.b32.xlu0 %v1073_v43, %s2678_s28 }
 0xe0e   :  { %1187 = vrot.lane.b32.xlu0 %v1073_v43, %s2679_s9 }
 0xe78   :  { %v1079_v45 = vpop.permute.xlu1 %1078 }
 0xe7c   :  { %v1076_v46 = vpop.permute.xlu0 %1075 }
 0xe7d   :  { %v1081_v47 = vsel %vm219_vm4, %v1076_v46, %v1079_v45 }
 0xe7e   :  { %2182 = vmatmul.mubr.msk.f32.vlgmr.msra.gmra.mrb[10].mxu1 %vm221_vm5, %v1081_v47 }
 0xe7f   :  { %2414 = vmatpush3.bf16.msra.mxu1 %v2769_v6  ;;  %2230 = vmatprep.mubr.msk.f32.mxu1 %vm2676_vm1, %v2674_v0 }
 0xe80   :  { %v1188_v49 = vpop.permute.xlu0 %1187  ;;  %2415 = vmatprep.subr.bf16.mxu1 %v2675_v1 }
 0xe81   :  { %v1190_v50 = vsel %vm107_vm2, %v1186_v48, %v1188_v49 }
 0xe82   :  { %2197 = vmatmul.mubr.msk.f32.vlgmr.msra.gmra.mrb[8].mxu0 %vm109_vm3, %v1190_v50 }
 0xe83   :  { %2402 = vmatpush3.bf16.msra.mxu0 %v2803_v34  ;;  %2417 = vmatpush3.bf16.msra.mxu1 %v2772_v9 }
 0xe84   :  { %2403 = vmatprep.subr.bf16.mxu0 %v2675_v1  ;;  %2215 = vmatprep.mubr.msk.f32.mxu0 %vm2676_vm1, %v2674_v0 }
 0xe85   :  { %2418 = vmatprep.subr.bf16.mxu1 %v2675_v1 }
 0xe87   :  { %2405 = vmatpush3.bf16.msra.mxu0 %v2806_v36  ;;  %2420 = vmatpush3.bf16.msra.mxu1 %v2779_v12 }
 0xe88   :  { %2406 = vmatprep.subr.bf16.mxu0 %v2675_v1  ;;  %2421 = vmatprep.subr.bf16.mxu1 %v2675_v1 }
 0xe8b   :  { %2408 = vmatpush3.bf16.msra.mxu0 %v2811_v40 }
 0xe8c   :  { %2409 = vmatprep.subr.bf16.mxu0 %v2675_v1 }
 0xe8f   :  { %2411 = vmatpush3.bf16.msra.mxu0 %v2816_v44 }
 0xe90   :  { %2433 = vmatprep.subr.bf16.mxu0 %v2675_v1 }
 0xf51   :  { %v1151_v51 = vpop.f32.mrb[10].mxu1 }
 0xf52   :  { %v1152_v52 = vadd.f32 %v2848_v53, %v1151_v51  ;;  %v2183_v54 = vpop.f32.mrb[11].mxu1 }
 0xf54   :  { %2540 = vtanh.f32 %v1152_v52  ;;  %v1869_v61 = vmul.f32 -1.442695, %v1152_v52 }
 0xf55   :  { %v1260_v55 = vpop.f32.mrb[8].mxu0 }
 0xf56   :  { %v1261_v57 = vadd.f32 %v2795_v16, %v1260_v55  ;;  %v2198_v58 = vpop.f32.mrb[9].mxu0 }
 0xf58   :  { %2542 = vtanh.f32 %v1261_v57  ;;  %v1872_v62 = vmul.f32 -1.442695, %v1261_v57 }
 0xf59   :  { %2544 = vpow2.f32 %v1869_v61 }
 0xf5a   :  { %2546 = vpow2.f32 %v1872_v62 }
 0xf5e   :  { %v2541_v59 = vpop.eup %2540 }
 0xf5f   :  { %1164 = vrot.lane.b32.xlu1 %v2541_v59, %s2671_s1 }
 0xf62   :  { %v2543_v60 = vpop.eup %2542 }
 0xf63   :  { %1273 = vrot.lane.b32.xlu0 %v2543_v60, %s2671_s1  ;;  %v2545_v63 = vpop.eup %2544 }
 0xf64   :  { %v1158_v2 = vadd.f32 1.0, %v2545_v63  ;;  %v2547_v3 = vpop.eup %2546 }
 0xf65   :  { %v1267_v4 = vadd.f32 1.0, %v2547_v3 }
 0xf66   :  { %2548 = vrcp.f32 %v1158_v2 }
 0xf67   :  { %2550 = vrcp.f32 %v1267_v4 }
 0xf70   :  { %v2549_v5 = vpop.eup %2548 }
 0xf71   :  { %v2551_v11 = vpop.eup %2550  ;;  %v1162_v15 = vmul.f32 %v2549_v5, %v2989_v31 }
 0xf72   :  { %v1271_v19 = vmul.f32 %v2551_v11, %v2993_v35 }
 0xfd1   :  { %v1165_v7 = vpop.permute.xlu1 %1164 }
 0xfd2   :  { %v1167_v8 = vmul.f32 %v2549_v5, %v1165_v7 }
 0xfd4   :  { %1169 = vrot.lane.b32.xlu1 %v1167_v8, %s2678_s28 }
 0xfd5   :  { %v1274_v13 = vpop.permute.xlu0 %1273 }
 0xfd6   :  { %v1276_v14 = vmul.f32 %v2551_v11, %v1274_v13 }
 0xfd8   :  { %1278 = vrot.lane.b32.xlu0 %v1276_v14, %s2678_s28 }
0x1046   :  { %v1170_v17 = vpop.permute.xlu1 %1169 }
0x1047   :  { %v3033_v18 = vadd.f32 %v1170_v17, %v1162_v15  ;;  %v1614_v15 = vld [vmem:[#allocation6 + $0x1c] sm:$0xf] }
0x1049   :  { %2552 = vtanh.f32 %v3033_v18 }
0x104a   :  { %v1279_v20 = vpop.permute.xlu0 %1278 }
0x104b   :  { %v3037_v21 = vadd.f32 %v1279_v20, %v1271_v19 }
0x104d   :  { %2554 = vtanh.f32 %v3037_v21 }
0x1053   :  { %v2553_v22 = vpop.eup %2552 }
0x1054   :  { %1175 = vrot.lane.b32.xlu1 %v2553_v22, %s2671_s1 }
0x1057   :  { %v2555_v23 = vpop.eup %2554 }
0x1058   :  { %1284 = vrot.lane.b32.xlu0 %v2555_v23, %s2671_s1 }
0x10c6   :  { %v1176_v24 = vpop.permute.xlu1 %1175 }
0x10c7   :  { %v3042_v25 = vmul.f32 %v2549_v5, %v1176_v24 }
0x10c9   :  { %1292 = vrot.lane.b32.xlu0 %v3042_v25, %s2671_s1 }
0x10ca   :  { %v1285_v26 = vpop.permute.xlu0 %1284 }
0x10cb   :  { %v1287_v28 = vmul.f32 %v2551_v11, %v1285_v26 }
0x10cd   :  { %1289 = vrot.lane.b32.xlu1 %v1287_v28, %s2678_s28 }
0x10d1   :  { %1401 = vrot.lane.b32.xlu1 %v1287_v28, %s2679_s9 }
0x113b   :  { %v1293_v29 = vpop.permute.xlu0 %1292 }
0x113f   :  { %v1290_v30 = vpop.permute.xlu1 %1289 }
0x1140   :  { %v1295_v31 = vsel %vm219_vm4, %v1290_v30, %v1293_v29 }
0x1141   :  { %2216 = vmatmul.mubr.msk.f32.vlgmr.msra.gmra.mrb[10].mxu0 %vm221_vm5, %v1295_v31 }
0x1142   :  { %2435 = vmatpush3.bf16.msra.mxu0 %v2769_v6  ;;  %2264 = vmatprep.mubr.msk.f32.mxu0 %vm2676_vm1, %v2674_v0 }
0x1143   :  { %v1402_v33 = vpop.permute.xlu1 %1401  ;;  %2436 = vmatprep.subr.bf16.mxu0 %v2675_v1 }
0x1144   :  { %v1404_v35 = vsel %vm107_vm2, %v1400_v32, %v1402_v33 }
0x1145   :  { %2231 = vmatmul.mubr.msk.f32.vlgmr.msra.gmra.mrb[12].mxu1 %vm109_vm3, %v1404_v35 }
0x1146   :  { %2423 = vmatpush3.bf16.msra.mxu1 %v2803_v34  ;;  %2438 = vmatpush3.bf16.msra.mxu0 %v2772_v9 }
0x1147   :  { %2424 = vmatprep.subr.bf16.mxu1 %v2675_v1  ;;  %2249 = vmatprep.mubr.msk.f32.mxu1 %vm2676_vm1, %v2674_v0 }
0x1148   :  { %2439 = vmatprep.subr.bf16.mxu0 %v2675_v1 }
0x114a   :  { %2426 = vmatpush3.bf16.msra.mxu1 %v2806_v36  ;;  %2441 = vmatpush3.bf16.msra.mxu0 %v2779_v12 }
0x114b   :  { %2427 = vmatprep.subr.bf16.mxu1 %v2675_v1  ;;  %2442 = vmatprep.subr.bf16.mxu0 %v2675_v1 }
0x114e   :  { %2429 = vmatpush3.bf16.msra.mxu1 %v2811_v40 }
0x114f   :  { %2430 = vmatprep.subr.bf16.mxu1 %v2675_v1 }
0x1152   :  { %2432 = vmatpush3.bf16.msra.mxu1 %v2816_v44 }
0x1214   :  { %v1365_v6 = vpop.f32.mrb[10].mxu0 }
0x1215   :  { %v1366_v9 = vadd.f32 %v2848_v53, %v1365_v6  ;;  %v2217_v37 = vpop.f32.mrb[11].mxu0 }
0x1217   :  { %2556 = vtanh.f32 %v1366_v9  ;;  %v1874_v45 = vmul.f32 -1.442695, %v1366_v9 }
0x1218   :  { %v1474_v38 = vpop.f32.mrb[12].mxu1 }
0x1219   :  { %v1475_v39 = vadd.f32 %v2795_v16, %v1474_v38  ;;  %v2232_v42 = vpop.f32.mrb[13].mxu1 }
0x121b   :  { %2558 = vtanh.f32 %v1475_v39  ;;  %v1877_v46 = vmul.f32 -1.442695, %v1475_v39 }
0x121c   :  { %2560 = vpow2.f32 %v1874_v45 }
0x121d   :  { %2562 = vpow2.f32 %v1877_v46 }
0x1221   :  { %v2557_v12 = vpop.eup %2556 }
0x1222   :  { %1378 = vrot.lane.b32.xlu0 %v2557_v12, %s2671_s1 }
0x1225   :  { %v2559_v43 = vpop.eup %2558 }
0x1226   :  { %1487 = vrot.lane.b32.xlu1 %v2559_v43, %s2671_s1  ;;  %v2561_v47 = vpop.eup %2560 }
0x1227   :  { %v1372_v48 = vadd.f32 1.0, %v2561_v47  ;;  %v2563_v49 = vpop.eup %2562 }
0x1228   :  { %v1481_v50 = vadd.f32 1.0, %v2563_v49 }
0x1229   :  { %2564 = vrcp.f32 %v1372_v48 }
0x122a   :  { %2566 = vrcp.f32 %v1481_v50 }
0x1233   :  { %v2565_v51 = vpop.eup %2564 }
0x1234   :  { %v2567_v54 = vpop.eup %2566  ;;  %v1376_v58 = vmul.f32 %v2565_v51, %v3033_v18 }
0x1235   :  { %v1485_v61 = vmul.f32 %v2567_v54, %v3037_v21 }
0x1294   :  { %v1379_v16 = vpop.permute.xlu0 %1378 }
0x1295   :  { %v1381_v52 = vmul.f32 %v2565_v51, %v1379_v16 }
0x1297   :  { %1383 = vrot.lane.b32.xlu0 %v1381_v52, %s2678_s28 }
0x1298   :  { %v1488_v55 = vpop.permute.xlu1 %1487 }
0x1299   :  { %v1490_v57 = vmul.f32 %v2567_v54, %v1488_v55 }
0x129b   :  { %1492 = vrot.lane.b32.xlu1 %v1490_v57, %s2678_s28 }
0x1309   :  { %v1384_v59 = vpop.permute.xlu0 %1383 }
0x130a   :  { %v3076_v60 = vadd.f32 %v1384_v59, %v1376_v58 }
0x130c   :  { %2568 = vtanh.f32 %v3076_v60 }
0x130d   :  { %v1493_v62 = vpop.permute.xlu1 %1492 }
0x130e   :  { %v3080_v63 = vadd.f32 %v1493_v62, %v1485_v61 }
0x1310   :  { %2570 = vtanh.f32 %v3080_v63 }
0x1316   :  { %v2569_v2 = vpop.eup %2568 }
0x1317   :  { %1389 = vrot.lane.b32.xlu0 %v2569_v2, %s2671_s1 }
0x131a   :  { %v2571_v3 = vpop.eup %2570 }
0x131b   :  { %1498 = vrot.lane.b32.xlu1 %v2571_v3, %s2671_s1 }
0x1389   :  { %v1390_v4 = vpop.permute.xlu0 %1389 }
0x138a   :  { %v3085_v5 = vmul.f32 %v2565_v51, %v1390_v4 }
0x138c   :  { %1506 = vrot.lane.b32.xlu1 %v3085_v5, %s2671_s1 }
0x138d   :  { %v1499_v7 = vpop.permute.xlu1 %1498 }
0x138e   :  { %v1501_v8 = vmul.f32 %v2567_v54, %v1499_v7 }
0x1390   :  { %1503 = vrot.lane.b32.xlu0 %v1501_v8, %s2678_s28 }
0x1394   :  { %1615 = vrot.lane.b32.xlu0 %v1501_v8, %s2679_s9 }
0x13fe   :  { %v1507_v11 = vpop.permute.xlu1 %1506 }
0x1402   :  { %v1504_v13 = vpop.permute.xlu0 %1503 }
0x1403   :  { %v1509_v14 = vsel %vm219_vm4, %v1504_v13, %v1507_v11 }
0x1404   :  { %2250 = vmatmul.mubr.msk.f32.vlgmr.msra.gmra.mrb[14].mxu1 %vm221_vm5, %v1509_v14 }
0x1406   :  { %v1616_v17 = vpop.permute.xlu0 %1615 }
0x1407   :  { %v1618_v18 = vsel %vm107_vm2, %v1614_v15, %v1616_v17 }
0x1408   :  { %2265 = vmatmul.mubr.msk.f32.vlgmr.msra.gmra.mrb[12].mxu0 %vm109_vm3, %v1618_v18 }
0x1409   :  { %2444 = vmatpush3.bf16.msra.mxu0 %v2803_v34  ;;  %2283 = vmatprep.mubr.msk.f32.mxu0 %vm2676_vm1, %v2674_v0  ;;  %v2596_v0 = vld [vmem:[%s3176_s2] ss:$0 sm:$0xff]  ;;  %s2680_s2 = smov 96  }
0x140a   :  { %2445 = vmatprep.subr.bf16.mxu0 %v2675_v1 }
0x140d   :  { %2447 = vmatpush3.bf16.msra.mxu0 %v2806_v36 }
0x140e   :  { %2448 = vmatprep.subr.bf16.mxu0 %v2675_v1 }
0x1411   :  { %2450 = vmatpush3.bf16.msra.mxu0 %v2811_v40 }
0x1412   :  { %2451 = vmatprep.subr.bf16.mxu0 %v2675_v1 }
0x1415   :  { %2453 = vmatpush3.bf16.msra.mxu0 %v2816_v44 }
0x14d7   :  { %v1579_v19 = vpop.f32.mrb[14].mxu1 }
0x14d8   :  { %v1580_v20 = vadd.f32 %v2848_v53, %v1579_v19  ;;  %v2251_v21 = vpop.f32.mrb[15].mxu1 }
0x14da   :  { %2572 = vtanh.f32 %v1580_v20  ;;  %v1879_v1 = vmul.f32 -1.442695, %v1580_v20 }
0x14db   :  { %v1688_v34 = vpop.f32.mrb[12].mxu0 }
0x14dc   :  { %v1689_v22 = vadd.f32 %v2596_v0, %v1688_v34  ;;  %v2266_v36 = vpop.f32.mrb[13].mxu0 }
0x14de   :  { %2574 = vtanh.f32 %v1689_v22  ;;  %v1882_v44 = vmul.f32 -1.442695, %v1689_v22 }
0x14df   :  { %2576 = vpow2.f32 %v1879_v1 }
0x14e0   :  { %2578 = vpow2.f32 %v1882_v44 }
0x14e4   :  { %v2573_v23 = vpop.eup %2572 }
0x14e5   :  { %1592 = vrot.lane.b32.xlu1 %v2573_v23, %s2671_s1 }
0x14e8   :  { %v2575_v40 = vpop.eup %2574 }
0x14e9   :  { %1701 = vrot.lane.b32.xlu0 %v2575_v40, %s2671_s1  ;;  %v2577_v24 = vpop.eup %2576 }
0x14ea   :  { %v1586_v26 = vadd.f32 1.0, %v2577_v24  ;;  %v2579_v28 = vpop.eup %2578 }
0x14eb   :  { %v1695_v29 = vadd.f32 1.0, %v2579_v28 }
0x14ec   :  { %2580 = vrcp.f32 %v1586_v26 }
0x14ed   :  { %2582 = vrcp.f32 %v1695_v29 }
0x14f6   :  { %v2581_v30 = vpop.eup %2580 }
0x14f7   :  { %v2583_v33 = vpop.eup %2582  ;;  %v1590_v9 = vmul.f32 %v2581_v30, %v3076_v60 }
0x14f8   :  { %v1699_v39 = vmul.f32 %v2583_v33, %v3080_v63 }
0x1557   :  { %v1593_v31 = vpop.permute.xlu1 %1592 }
0x1558   :  { %v1595_v32 = vmul.f32 %v2581_v30, %v1593_v31 }
0x155a   :  { %1597 = vrot.lane.b32.xlu1 %v1595_v32, %s2678_s28 }
0x155b   :  { %v1702_v35 = vpop.permute.xlu0 %1701 }
0x155c   :  { %v1704_v6 = vmul.f32 %v2583_v33, %v1702_v35 }
0x155e   :  { %1706 = vrot.lane.b32.xlu0 %v1704_v6, %s2678_s28 }
0x15cc   :  { %v1598_v37 = vpop.permute.xlu1 %1597 }
0x15cd   :  { %v1600_v38 = vadd.f32 %v1598_v37, %v1590_v9 }
0x15cf   :  { %2584 = vtanh.f32 %v1600_v38 }
0x15d0   :  { %v1707_v42 = vpop.permute.xlu0 %1706 }
0x15d1   :  { %v1709_v12 = vadd.f32 %v1707_v42, %v1699_v39 }
0x15d3   :  { %2586 = vtanh.f32 %v1709_v12 }
0x15d9   :  { %v2585_v43 = vpop.eup %2584 }
0x15da   :  { %1603 = vrot.lane.b32.xlu1 %v2585_v43, %s2671_s1 }
0x15dd   :  { %v2587_v45 = vpop.eup %2586 }
0x15de   :  { %1712 = vrot.lane.b32.xlu0 %v2587_v45, %s2671_s1 }
0x164c   :  { %v1604_v46 = vpop.permute.xlu1 %1603 }
0x164d   :  { %v1606_v47 = vmul.f32 %v2581_v30, %v1604_v46 }
0x164f   :  { %1720 = vrot.lane.b32.xlu0 %v1606_v47, %s2671_s1 }
0x1650   :  { %v1713_v48 = vpop.permute.xlu0 %1712 }
0x1651   :  { %v1715_v49 = vmul.f32 %v2583_v33, %v1713_v48 }
0x1653   :  { %1717 = vrot.lane.b32.xlu1 %v1715_v49, %s2678_s28 }
0x16c1   :  { %v1721_v50 = vpop.permute.xlu0 %1720 }
0x16c5   :  { %v1718_v51 = vpop.permute.xlu1 %1717 }
0x16c6   :  { %v1723_v16 = vsel %vm219_vm4, %v1718_v51, %v1721_v50  ;;  %1827 = vst.msk [vmem:[#allocation2] sm:$0xf] %vm65_vm0, %v1718_v51 }
0x16c7   :  { %2284 = vmatmul.mubr.msk.f32.vlgmr.msra.gmra.mrb[14].mxu0 %vm221_vm5, %v1723_v16 }
0x179a   :  { %v1793_v52 = vpop.f32.mrb[14].mxu0 }
0x179b   :  { %v1794_v54 = vadd.f32 %v2848_v53, %v1793_v52  ;;  %v2285_v55 = vpop.f32.mrb[15].mxu0 }
0x179d   :  { %2588 = vtanh.f32 %v1794_v54  ;;  %v1884_v58 = vmul.f32 -1.442695, %v1794_v54 }
0x179f   :  { %2590 = vpow2.f32 %v1884_v58 }
0x17a7   :  { %v2589_v57 = vpop.eup %2588 }
0x17a8   :  { %1806 = vrot.lane.b32.xlu1 %v2589_v57, %s2671_s1 }
0x17a9   :  { %v2591_v59 = vpop.eup %2590 }
0x17aa   :  { %v1800_v60 = vadd.f32 1.0, %v2591_v59 }
0x17ac   :  { %2592 = vrcp.f32 %v1800_v60 }
0x17b6   :  { %v2593_v61 = vpop.eup %2592 }
0x17b7   :  { %v1804_v53 = vmul.f32 %v2593_v61, %v1600_v38 }
0x181a   :  { %v1807_v62 = vpop.permute.xlu1 %1806 }
0x181b   :  { %v1809_v63 = vmul.f32 %v2593_v61, %v1807_v62 }
0x181d   :  { %1811 = vrot.lane.b32.xlu0 %v1809_v63, %s2678_s28 }
0x1821   :  { %324 = vrot.lane.b32.xlu0 %v2866_v27, %s2678_s28 }
0x1825   :  { %752 = vrot.lane.b32.xlu0 %v2954_v56, %s2678_s28 }
0x1829   :  { %1180 = vrot.lane.b32.xlu0 %v3042_v25, %s2678_s28 }
0x182d   :  { %1608 = vrot.lane.b32.xlu0 %v1606_v47, %s2678_s28 }
0x1831   :  { %1829 = vrot.lane.b32.xlu0 %v1709_v12, %s2680_s2 }
0x188f   :  { %v1812_v2 = vpop.permute.xlu0 %1811 }
0x1890   :  { %v1814_v3 = vadd.f32 %v1812_v2, %v1804_v53 }
0x1892   :  { %2594 = vtanh.f32 %v1814_v3 }
0x1893   :  { %v325_v4 = vpop.permute.xlu0 %324 }
0x1894   :  { %328 = vst.msk [vmem:[%s3179_s5] sm:$0xf] %vm65_vm0, %v325_v4 }
0x1897   :  { %v753_v27 = vpop.permute.xlu0 %752 }
0x1898   :  { %1860 = vst.msk [vmem:[%s3179_s5 + $0x8] sm:$0xf] %vm65_vm0, %v753_v27 }
0x189b   :  { %v1181_v56 = vpop.permute.xlu0 %1180 }
0x189c   :  { %v2595_v25 = vpop.eup %2594  ;;  %1870 = vst.msk [vmem:[%s3179_s5 + $0x10] sm:$0xf] %vm65_vm0, %v1181_v56 }
0x189d   :  { %1817 = vrot.lane.b32.xlu1 %v2595_v25, %s2671_s1 }
0x189f   :  { %v1609_v7 = vpop.permute.xlu0 %1608 }
0x18a0   :  { %1880 = vst.msk [vmem:[%s3179_s5 + $0x18] sm:$0xf] %vm65_vm0, %v1609_v7 }
0x18a1   :  { %538 = vrot.lane.b32.xlu1 %v2910_v10, %s2678_s28 }
0x18a3   :  { %v1830_v8 = vpop.permute.xlu0 %1829 }
0x18a4   :  { %1832 = vst.msk [vmem:[#allocation3] sm:$0xf] %vm65_vm0, %v1830_v8 }
0x18a5   :  { %966 = vrot.lane.b32.xlu1 %v2998_v41, %s2678_s28 }
0x18a9   :  { %1394 = vrot.lane.b32.xlu1 %v3085_v5, %s2678_s28 }
0x190f   :  { %v1818_v11 = vpop.permute.xlu1 %1817 }
0x1910   :  { %v1820_v13 = vmul.f32 %v2593_v61, %v1818_v11 }
0x1912   :  { %1822 = vrot.lane.b32.xlu1 %v1820_v13, %s2678_s28 }
0x1913   :  { %v539_v14 = vpop.permute.xlu1 %538 }
0x1914   :  { %1855 = vst.msk [vmem:[%s3179_s5 + $0x4] sm:$0xf] %vm65_vm0, %v539_v14 }
0x1916   :  { %1835 = vrot.lane.b32.xlu1 %v1814_v3, %s2680_s2 }
0x1917   :  { %v967_v10 = vpop.permute.xlu1 %966 }
0x1918   :  { %1865 = vst.msk [vmem:[%s3179_s5 + $0xc] sm:$0xf] %vm65_vm0, %v967_v10 }
0x191b   :  { %v1395_v41 = vpop.permute.xlu1 %1394 }
0x191c   :  { %1875 = vst.msk [vmem:[%s3179_s5 + $0x14] sm:$0xf] %vm65_vm0, %v1395_v41 }
0x1984   :  { %v1823_v5 = vpop.permute.xlu1 %1822 }
0x1985   :  { %1885 = vst.msk [vmem:[%s3179_s5 + $0x1c] sm:$0xf] %vm65_vm0, %v1823_v5  ;;  %1833 = vst.msk [vmem:[#allocation4] sm:$0xf] %vm65_vm0, %v1823_v5 }
0x1988   :  { %v1836_v15 = vpop.permute.xlu1 %1835 }
0x1989   :  { %1838 = vst.msk [vmem:[#allocation5] sm:$0xf] %vm65_vm0, %v1836_v15 }
0x198a   :  { %1843 = vsyncpa [#allocation7], 1 }
0x198b   :  { %1844 = vsyncpa [#allocation9], 1 }

</bundles_post_ra>
